<compile_context>
chip_gen: v7x
topology: tpu7x:2x2x1
jax: 0.10.0
libtpu: 0.0.40
codegen_flags: <defaults>
</compile_context>

<pallas_src>
import functools

import jax
import jax.numpy as jnp
from jax.experimental import pallas as pl
from jax.experimental.pallas import tpu as pltpu

EPS = 1e-5


def _round_up(x, m):
    return ((x + m - 1) // m) * m


def _vmem_limit_bytes():
    """~half of physical VMEM: 64 MiB on v5e/v6e (128 MiB phys), 32 MiB on v7x."""
    try:
        info = pltpu.get_tpu_info()
        cap = int(getattr(info, "vmem_capacity_bytes", 0) or 0)
    except Exception:
        cap = 0
    if cap <= 0:
        cap = 128 * 1024 * 1024
    return max(32 * 1024 * 1024, min(cap // 2, 96 * 1024 * 1024))


_VMEM_LIMIT = _vmem_limit_bytes()


# --------------------------- Pallas kernels --------------------------- #
# Pass 1 (grid over batch images, "parallel"):
#   conv = sum over taps (i,j) of  x_phase[(i%s, j%s)][window] @ w[i,j]
# with all tap windows being *contiguous* slices of the flattened per-phase
# input (rows are computed at the full padded width; columns >= Wo are garbage
# and are masked out of the BN statistics and cropped at the end).

def _make_pass1_kernel(KH, KW, stride, Ho, Wps, has_projection, pad):
    MW = Ho * Wps

    def kernel(*refs):
        if has_projection:
            (mask_ref, x_ref, w_ref, ws_ref,
             conv_ref, sc_ref, stats_ref, acc_ref) = refs
        else:
            mask_ref, x_ref, w_ref, conv_ref, stats_ref, acc_ref = refs

        # KH*KW shifted matmuls, statically unrolled (static slice offsets),
        # weights resident in VMEM, f32 accumulation in a VMEM scratch.
        first = True
        for i in range(KH):
            for j in range(KW):
                p = (i % stride) * stride + (j % stride)
                start = (i // stride) * Wps + (j // stride)
                x_win = x_ref[0, p, start:start + MW, :]            # (MW, Cin) bf16
                contrib = jnp.dot(x_win, w_ref[i * KW + j],
                                  preferred_element_type=jnp.float32)
                if first:
                    acc_ref[...] = contrib
                    first = False
                else:
                    acc_ref[...] += contrib

        conv = acc_ref[...]                                         # (MW, Cout) f32
        conv_ref[0] = conv.astype(conv_ref.dtype)                   # bf16 writeback

        # Per-image partial BN statistics (f32), masked to the valid columns.
        mask = mask_ref[...]                                        # (MW, 1)
        cm = conv * mask
        stats_ref[0, 0:1, :] = jnp.sum(cm, axis=0, keepdims=True)
        stats_ref[0, 1:2, :] = jnp.sum(cm * conv, axis=0, keepdims=True)

        if has_projection:
            # 1x1 stride-s shortcut conv == the (pad, pad) tap window.
            p = (pad % stride) * stride + (pad % stride)
            start = (pad // stride) * Wps + (pad // stride)
            x_sc = x_ref[0, p, start:start + MW, :]
            sc = jnp.dot(x_sc, ws_ref[...], preferred_element_type=jnp.float32)
            sc_ref[0] = sc.astype(sc_ref.dtype)
            scm = sc * mask
            stats_ref[0, 2:3, :] = jnp.sum(scm, axis=0, keepdims=True)
            stats_ref[0, 3:4, :] = jnp.sum(scm * sc, axis=0, keepdims=True)

    return kernel


# Pass 2 (grid over batch images, "parallel"): folded BN affine + shortcut
# + ReLU on the bf16 intermediates, f32 VPU math.

def _pass2_proj_kernel(conv_ref, sc_ref, ab_ref, o_ref):
    a1 = ab_ref[0:1, :]
    b1 = ab_ref[1:2, :]
    a2 = ab_ref[2:3, :]
    b2 = ab_ref[3:4, :]
    y = (conv_ref[0].astype(jnp.float32) * a1 + b1
         + sc_ref[0].astype(jnp.float32) * a2 + b2)
    o_ref[0] = jnp.maximum(y, 0.0)


def _make_pass2_id_kernel(start0, MW):
    def kernel(conv_ref, x_ref, ab_ref, o_ref):
        a1 = ab_ref[0:1, :]
        b1 = ab_ref[1:2, :]
        ident = x_ref[0, 0, start0:start0 + MW, :].astype(jnp.float32)
        y = conv_ref[0].astype(jnp.float32) * a1 + b1 + ident
        o_ref[0] = jnp.maximum(y, 0.0)
    return kernel


# ------------------------------ JAX glue ------------------------------ #

@functools.partial(jax.jit, static_argnums=(2, 3))
def conv_block_forward_nhwc(x_nhwc, params, kernel_size, stride):
    """ConvBlock forward, NHWC in / NHWC out (preferred entry point)."""
    N, H, W, Cin = x_nhwc.shape
    conv_w = params["conv_w"]                                   # (Cout, Cin, KH, KW)
    Cout = conv_w.shape[0]
    KH = KW = kernel_size
    s = stride
    pad = kernel_size // 2

    Ho = (H + 2 * pad - KH) // s + 1
    Wo = (W + 2 * pad - KW) // s + 1
    P = s * s
    T = KH * KW

    # Phase-decomposed (space-to-batch by stride), zero-padded input: tap (i,j)
    # of the conv reads a contiguous full-width window of phase (i%s, j%s).
    Hps = max(-(-(H + 2 * pad) // s), Ho + (KH - 1) // s + 1)   # +1 row: full-width over-read
    Wps = max(-(-(W + 2 * pad) // s), Wo + (KW - 1) // s)
    Lp = Hps * Wps
    MW = Ho * Wps                                               # full-width rows per image

    # Channels padded only to the sublane quantum (8), not 128 (review item).
    Cinp = _round_up(Cin, 8)
    Cp = _round_up(Cout, 8)

    xpad = jnp.pad(x_nhwc.astype(jnp.float32),
                   ((0, 0), (pad, Hps * s - H - pad),
                    (pad, Wps * s - W - pad), (0, Cinp - Cin)))
    x_ph = xpad.reshape(N, Hps, s, Wps, s, Cinp).transpose(0, 2, 4, 1, 3, 5)
    x_ph = x_ph.reshape(N, P, Lp, Cinp).astype(jnp.bfloat16)

    w = jnp.transpose(conv_w.astype(jnp.float32), (2, 3, 1, 0)).reshape(T, Cin, Cout)
    w = jnp.pad(w, ((0, 0), (0, Cinp - Cin), (0, Cp - Cout))).astype(jnp.bfloat16)

    # Valid-column mask (columns >= Wo of each full-width row are garbage).
    mask = ((jnp.arange(MW) % Wps) < Wo).astype(jnp.float32).reshape(MW, 1)

    gamma = jnp.pad(params["bn_gamma"].astype(jnp.float32), (0, Cp - Cout))
    beta = jnp.pad(params["bn_beta"].astype(jnp.float32), (0, Cp - Cout))

    has_projection = (stride != 1) or (Cin != Cout)

    cparams = pltpu.CompilerParams(dimension_semantics=("parallel",),
                                   vmem_limit_bytes=_VMEM_LIMIT)

    x_spec = pl.BlockSpec((1, P, Lp, Cinp), lambda n: (n, 0, 0, 0))
    w_spec = pl.BlockSpec((T, Cinp, Cp), lambda n: (0, 0, 0))
    mask_spec = pl.BlockSpec((MW, 1), lambda n: (0, 0))
    conv_spec = pl.BlockSpec((1, MW, Cp), lambda n: (n, 0, 0))

    kernel1 = _make_pass1_kernel(KH, KW, s, Ho, Wps, has_projection, pad)
    # TODO(synk): for very large feature maps, tile Ho with halo DMA
    # (memory_space=pl.ANY + pltpu.make_async_copy) instead of whole-image blocks.
    # TODO(synk): add a Cout (TN) grid axis for very large Cout on v7x (64 MiB VMEM).

    if has_projection:
        ws = jnp.transpose(params["sc_w"].astype(jnp.float32),
                           (2, 3, 1, 0)).reshape(Cin, Cout)
        ws = jnp.pad(ws, ((0, Cinp - Cin), (0, Cp - Cout))).astype(jnp.bfloat16)
        nstats = 4
        flops1 = 2 * N * MW * Cinp * Cp * (T + 1)
        bytes1 = (N * P * Lp * Cinp * 2 + T * Cinp * Cp * 2 + Cinp * Cp * 2
                  + MW * 4 + 2 * N * MW * Cp * 2 + N * nstats * Cp * 4)
        conv, sc, stats = pl.pallas_call(
            kernel1,
            out_shape=(jax.ShapeDtypeStruct((N, MW, Cp), jnp.bfloat16),
                       jax.ShapeDtypeStruct((N, MW, Cp), jnp.bfloat16),
                       jax.ShapeDtypeStruct((N, nstats, Cp), jnp.float32)),
            grid=(N,),
            in_specs=[mask_spec, x_spec, w_spec,
                      pl.BlockSpec((Cinp, Cp), lambda n: (0, 0))],
            out_specs=(conv_spec, conv_spec,
                       pl.BlockSpec((1, nstats, Cp), lambda n: (n, 0, 0))),
            scratch_shapes=[pltpu.VMEM((MW, Cp), jnp.float32)],
            compiler_params=cparams,
            cost_estimate=pl.CostEstimate(flops=flops1, transcendentals=0,
                                          bytes_accessed=bytes1),
        )(mask, x_ph, w, ws)
    else:
        nstats = 2
        flops1 = 2 * N * MW * Cinp * Cp * T
        bytes1 = (N * P * Lp * Cinp * 2 + T * Cinp * Cp * 2 + MW * 4
                  + N * MW * Cp * 2 + N * nstats * Cp * 4)
        conv, stats = pl.pallas_call(
            kernel1,
            out_shape=(jax.ShapeDtypeStruct((N, MW, Cp), jnp.bfloat16),
                       jax.ShapeDtypeStruct((N, nstats, Cp), jnp.float32)),
            grid=(N,),
            in_specs=[mask_spec, x_spec, w_spec],
            out_specs=(conv_spec,
                       pl.BlockSpec((1, nstats, Cp), lambda n: (n, 0, 0))),
            scratch_shapes=[pltpu.VMEM((MW, Cp), jnp.float32)],
            compiler_params=cparams,
            cost_estimate=pl.CostEstimate(flops=flops1, transcendentals=0,
                                          bytes_accessed=bytes1),
        )(mask, x_ph, w)

    # Fold BatchNorm (training-mode biased batch stats over N*Ho*Wo) into a
    # per-channel affine y = conv*a + b.  Partials are combined in f32 here.
    stats_tot = jnp.sum(stats, axis=0)                          # (nstats, Cp)
    cnt = jnp.float32(N * Ho * Wo)
    mu = stats_tot[0] / cnt
    var = jnp.maximum(stats_tot[1] / cnt - mu * mu, 0.0)
    a1 = gamma * jax.lax.rsqrt(var + EPS)
    b1 = beta - mu * a1

    if has_projection:
        sgamma = jnp.pad(params["sc_gamma"].astype(jnp.float32), (0, Cp - Cout))
        sbeta = jnp.pad(params["sc_beta"].astype(jnp.float32), (0, Cp - Cout))
        smu = stats_tot[2] / cnt
        svar = jnp.maximum(stats_tot[3] / cnt - smu * smu, 0.0)
        a2 = sgamma * jax.lax.rsqrt(svar + EPS)
        b2 = sbeta - smu * a2
        ab = jnp.stack([a1, b1, a2, b2])                        # (4, Cp)
        kernel2 = _pass2_proj_kernel
        second = sc
        second_spec = conv_spec
        bytes2 = 2 * N * MW * Cp * 2 + 4 * Cp * 4 + N * MW * Cp * 4
    else:
        ab = jnp.stack([a1, b1])                                # (2, Cp)
        kernel2 = _make_pass2_id_kernel(pad * Wps + pad, MW)
        second = x_ph                                           # identity slab (Cinp == Cp here)
        second_spec = x_spec
        bytes2 = N * MW * Cp * 2 + N * P * Lp * Cinp * 2 + 2 * Cp * 4 + N * MW * Cp * 4

    out = pl.pallas_call(
        kernel2,
        out_shape=jax.ShapeDtypeStruct((N, MW, Cp), jnp.float32),
        grid=(N,),
        in_specs=[conv_spec, second_spec,
                  pl.BlockSpec((ab.shape[0], Cp), lambda n: (0, 0))],
        out_specs=conv_spec,
        compiler_params=cparams,
        cost_estimate=pl.CostEstimate(flops=6 * N * MW * Cp, transcendentals=0,
                                      bytes_accessed=bytes2),
    )(conv, second, ab)

    # Crop the full-width garbage columns / padded channels (single XLA slice).
    out = out.reshape(N, Ho, Wps, Cp)[:, :, :Wo, :Cout]
    return out


@functools.partial(jax.jit, static_argnums=(2, 3))
def conv_block_forward(x_nchw, params, kernel_size, stride):
    """NCHW boundary wrapper (parity with the PyTorch module)."""
    # TODO(synk): keep activations NHWC across the whole network and call
    # conv_block_forward_nhwc directly to avoid these boundary transposes.
    x_nhwc = jnp.transpose(x_nchw, (0, 2, 3, 1))
    out = conv_block_forward_nhwc(x_nhwc, params, kernel_size, stride)
    return jnp.transpose(out, (0, 3, 1, 2))


# ------------------ pure-JAX reference (correctness check) ------------------ #

def _ref_conv_block(x_nchw, params, kernel_size, stride):
    pad = kernel_size // 2
    conv = jax.lax.conv_general_dilated(
        x_nchw, params["conv_w"], (stride, stride), [(pad, pad), (pad, pad)],
        dimension_numbers=("NCHW", "OIHW", "NCHW"),
        precision=jax.lax.Precision.HIGHEST)

    def bn(y, g, b):
        mu = jnp.mean(y, axis=(0, 2, 3), keepdims=True)
        var = jnp.mean(jnp.square(y - mu), axis=(0, 2, 3), keepdims=True)
        return ((y - mu) * jax.lax.rsqrt(var + EPS) * g.reshape(1, -1, 1, 1)
                + b.reshape(1, -1, 1, 1))

    out = bn(conv, params["bn_gamma"], params["bn_beta"])
    Cin, Cout = x_nchw.shape[1], conv.shape[1]
    if stride != 1 or Cin != Cout:
        sc = jax.lax.conv_general_dilated(
            x_nchw, params["sc_w"], (stride, stride), [(0, 0), (0, 0)],
            dimension_numbers=("NCHW", "OIHW", "NCHW"),
            precision=jax.lax.Precision.HIGHEST)
        ident = bn(sc, params["sc_gamma"], params["sc_beta"])
    else:
        ident = x_nchw
    return jnp.maximum(out + ident, 0.0)


# --------------------------------- demo --------------------------------- #

if __name__ == "__main__":
    key = jax.random.PRNGKey(0)
    ks = jax.random.split(key, 8)

    N, Cin, H, W = 2, 4, 16, 16
    Cout, ksize, stride = 8, 3, 2
    x = jax.random.normal(ks[0], (N, Cin, H, W), jnp.float32)

    params = {
        "conv_w":  0.1 * jax.random.normal(ks[1], (Cout, Cin, ksize, ksize), jnp.float32),
        "bn_gamma": 1.0 + 0.1 * jax.random.normal(ks[2], (Cout,), jnp.float32),
        "bn_beta":  0.1 * jax.random.normal(ks[3], (Cout,), jnp.float32),
        "sc_w":    0.1 * jax.random.normal(ks[4], (Cout, Cin, 1, 1), jnp.float32),
        "sc_gamma": 1.0 + 0.1 * jax.random.normal(ks[5], (Cout,), jnp.float32),
        "sc_beta":  0.1 * jax.random.normal(ks[6], (Cout,), jnp.float32),
    }

    # bf16 MXU operands (f32 accumulation) -> slightly looser tolerance than f32.
    TOL = 5e-2

    # Projection-shortcut configuration (stride=2, Cin != Cout).
    out = jax.block_until_ready(conv_block_forward(x, params, ksize, stride))
    assert out.shape == (N, Cout, H // stride, W // stride)
    ref = _ref_conv_block(x, params, ksize, stride)
    assert jnp.allclose(out, ref, atol=TOL, rtol=TOL), "projection-shortcut mismatch"

    # Identity-shortcut configuration (stride=1, in_channels == out_channels).
    params_id = {
        "conv_w":  0.1 * jax.random.normal(ks[7], (Cin, Cin, 3, 3), jnp.float32),
        "bn_gamma": params["bn_gamma"][:Cin],
        "bn_beta":  params["bn_beta"][:Cin],
    }
    out_id = jax.block_until_ready(conv_block_forward(x, params_id, 3, 1))
    ref_id = _ref_conv_block(x, params_id, 3, 1)
    assert out_id.shape == (N, Cin, H, W)
    assert jnp.allclose(out_id, ref_id, atol=TOL, rtol=TOL), "identity-shortcut mismatch"

    print("KERNEL_OK")
</pallas_src>

<mosaic_0001>
module attributes {stable_mosaic.version = 11 : i64} {
  func.func @_pass2_proj_kernel(%arg0: i32, %arg1: memref<1x72x8xbf16, #tpu.memory_space<vmem>>, %arg2: memref<1x72x8xbf16, #tpu.memory_space<vmem>>, %arg3: memref<4x8xf32, #tpu.memory_space<vmem>>, %arg4: memref<1x72x8xf32, #tpu.memory_space<vmem>>) attributes {dimension_semantics = [#tpu.dimension_semantics<parallel>], iteration_bounds = array<i64: 2>, scalar_prefetch = 0 : i64, scratch_operands = 0 : i64, tpu.core_type = #tpu.core_type<tc>, window_params = [{transform_indices = @transform_0, window_bounds = array<i64: 1, 72, 8>}, {transform_indices = @transform_1, window_bounds = array<i64: 1, 72, 8>}, {pipeline_mode = #tpu.pipeline_mode<synchronous>, transform_indices = @transform_2, window_bounds = array<i64: 4, 8>}, {transform_indices = @transform_3, window_bounds = array<i64: 1, 72, 8>}]} {
    %c0 = arith.constant 0 : index
    %c0_0 = arith.constant 0 : index
    %0 = vector.load %arg3[%c0, %c0_0] : memref<4x8xf32, #tpu.memory_space<vmem>>, vector<1x8xf32>
    %c1 = arith.constant 1 : index
    %c0_1 = arith.constant 0 : index
    %1 = vector.load %arg3[%c1, %c0_1] : memref<4x8xf32, #tpu.memory_space<vmem>>, vector<1x8xf32>
    %c2 = arith.constant 2 : index
    %c0_2 = arith.constant 0 : index
    %2 = vector.load %arg3[%c2, %c0_2] : memref<4x8xf32, #tpu.memory_space<vmem>>, vector<1x8xf32>
    %c3 = arith.constant 3 : index
    %c0_3 = arith.constant 0 : index
    %3 = vector.load %arg3[%c3, %c0_3] : memref<4x8xf32, #tpu.memory_space<vmem>>, vector<1x8xf32>
    %c0_4 = arith.constant 0 : index
    %c0_5 = arith.constant 0 : index
    %c0_6 = arith.constant 0 : index
    %4 = vector.load %arg1[%c0_4, %c0_5, %c0_6] : memref<1x72x8xbf16, #tpu.memory_space<vmem>>, vector<1x72x8xbf16>
    %5 = vector.shape_cast %4 : vector<1x72x8xbf16> to vector<72x8xbf16>
    %6 = arith.extf %5 : vector<72x8xbf16> to vector<72x8xf32>
    %7 = vector.broadcast %0 : vector<1x8xf32> to vector<72x8xf32>
    %8 = arith.mulf %6, %7 : vector<72x8xf32>
    %9 = vector.broadcast %1 : vector<1x8xf32> to vector<72x8xf32>
    %10 = arith.addf %8, %9 : vector<72x8xf32>
    %c0_7 = arith.constant 0 : index
    %c0_8 = arith.constant 0 : index
    %c0_9 = arith.constant 0 : index
    %11 = vector.load %arg2[%c0_7, %c0_8, %c0_9] : memref<1x72x8xbf16, #tpu.memory_space<vmem>>, vector<1x72x8xbf16>
    %12 = vector.shape_cast %11 : vector<1x72x8xbf16> to vector<72x8xbf16>
    %13 = arith.extf %12 : vector<72x8xbf16> to vector<72x8xf32>
    %14 = vector.broadcast %2 : vector<1x8xf32> to vector<72x8xf32>
    %15 = arith.mulf %13, %14 : vector<72x8xf32>
    %16 = arith.addf %10, %15 : vector<72x8xf32>
    %17 = vector.broadcast %3 : vector<1x8xf32> to vector<72x8xf32>
    %18 = arith.addf %16, %17 : vector<72x8xf32>
    %cst = arith.constant 0.000000e+00 : f32
    %19 = vector.broadcast %cst : f32 to vector<72x8xf32>
    %20 = arith.maximumf %18, %19 : vector<72x8xf32>
    %c0_10 = arith.constant 0 : index
    %c0_11 = arith.constant 0 : index
    %c0_12 = arith.constant 0 : index
    %21 = vector.load %arg4[%c0_10, %c0_11, %c0_12] : memref<1x72x8xf32, #tpu.memory_space<vmem>>, vector<1x72x8xf32>
    %22 = vector.shape_cast %21 : vector<1x72x8xf32> to vector<72x8xf32>
    %23 = vector.shape_cast %20 : vector<72x8xf32> to vector<1x72x8xf32>
    tpu.vector_store %arg4[%c0_10, %c0_11, %c0_12], %23 {strides = array<i32>} : memref<1x72x8xf32, #tpu.memory_space<vmem>>, vector<1x72x8xf32>,
    return
  }
  func.func @transform_0(%arg0: i32) -> (i32, i32, i32) {
    %c0_i32 = arith.constant 0 : i32
    %c0_i32_0 = arith.constant 0 : i32
    %c0_i32_1 = arith.constant 0 : i32
    return %arg0, %c0_i32, %c0_i32_0 : i32, i32, i32
  }
  func.func @transform_1(%arg0: i32) -> (i32, i32, i32) {
    %c0_i32 = arith.constant 0 : i32
    %c0_i32_0 = arith.constant 0 : i32
    %c0_i32_1 = arith.constant 0 : i32
    return %arg0, %c0_i32, %c0_i32_0 : i32, i32, i32
  }
  func.func @transform_2(%arg0: i32) -> (i32, i32) {
    %c0_i32 = arith.constant 0 : i32
    %c0_i32_0 = arith.constant 0 : i32
    %c0_i32_1 = arith.constant 0 : i32
    return %c0_i32, %c0_i32_0 : i32, i32
  }
  func.func @transform_3(%arg0: i32) -> (i32, i32, i32) {
    %c0_i32 = arith.constant 0 : i32
    %c0_i32_0 = arith.constant 0 : i32
    %c0_i32_1 = arith.constant 0 : i32
    return %arg0, %c0_i32, %c0_i32_0 : i32, i32, i32
  }
}

module attributes {stable_mosaic.version = 11 : i64} {
  func.func @kernel(%arg0: i32, %arg1: memref<72x1xf32, #tpu.memory_space<vmem>>, %arg2: memref<1x4x90x8xbf16, #tpu.memory_space<vmem>>, %arg3: memref<9x8x8xbf16, #tpu.memory_space<vmem>>, %arg4: memref<8x8xbf16, #tpu.memory_space<vmem>>, %arg5: memref<1x72x8xbf16, #tpu.memory_space<vmem>>, %arg6: memref<1x72x8xbf16, #tpu.memory_space<vmem>>, %arg7: memref<1x4x8xf32, #tpu.memory_space<vmem>>, %arg8: memref<72x8xf32, #tpu.memory_space<vmem>>) attributes {dimension_semantics = [#tpu.dimension_semantics<parallel>], iteration_bounds = array<i64: 2>, scalar_prefetch = 0 : i64, scratch_operands = 1 : i64, tpu.core_type = #tpu.core_type<tc>, window_params = [{pipeline_mode = #tpu.pipeline_mode<synchronous>, transform_indices = @transform_0, window_bounds = array<i64: 72, 1>}, {transform_indices = @transform_1, window_bounds = array<i64: 1, 4, 90, 8>}, {pipeline_mode = #tpu.pipeline_mode<synchronous>, transform_indices = @transform_2, window_bounds = array<i64: 9, 8, 8>}, {pipeline_mode = #tpu.pipeline_mode<synchronous>, transform_indices = @transform_3, window_bounds = array<i64: 8, 8>}, {transform_indices = @transform_4, window_bounds = array<i64: 1, 72, 8>}, {transform_indices = @transform_5, window_bounds = array<i64: 1, 72, 8>}, {transform_indices = @transform_6, window_bounds = array<i64: 1, 4, 8>}]} {
    %c0 = arith.constant 0 : index
    %c0_0 = arith.constant 0 : index
    %c0_1 = arith.constant 0 : index
    %c0_2 = arith.constant 0 : index
    %0 = vector.load %arg2[%c0, %c0_0, %c0_1, %c0_2] : memref<1x4x90x8xbf16, #tpu.memory_space<vmem>>, vector<1x1x72x8xbf16>
    %1 = vector.shape_cast %0 : vector<1x1x72x8xbf16> to vector<72x8xbf16>
    %c0_3 = arith.constant 0 : index
    %c0_4 = arith.constant 0 : index
    %c0_5 = arith.constant 0 : index
    %2 = vector.load %arg3[%c0_3, %c0_4, %c0_5] : memref<9x8x8xbf16, #tpu.memory_space<vmem>>, vector<1x8x8xbf16>
    %3 = vector.shape_cast %2 : vector<1x8x8xbf16> to vector<8x8xbf16>
    %cst = arith.constant dense<0.000000e+00> : vector<72x8xf32>
    %4 = tpu.matmul %1, %3, %cst {dimension_numbers = #tpu.dot_dimension_numbers<[1], [0], [0], [1], [0, 0, 1, 1], [], []>} : vector<72x8xbf16>, vector<8x8xbf16>, vector<72x8xf32> -> vector<72x8xf32>
    %c0_6 = arith.constant 0 : index
    %c0_7 = arith.constant 0 : index
    %5 = vector.load %arg8[%c0_6, %c0_7] : memref<72x8xf32, #tpu.memory_space<vmem>>, vector<72x8xf32>
    tpu.vector_store %arg8[%c0_6, %c0_7], %4 {strides = array<i32>} : memref<72x8xf32, #tpu.memory_space<vmem>>, vector<72x8xf32>,
    %c0_8 = arith.constant 0 : index
    %c1 = arith.constant 1 : index
    %c0_9 = arith.constant 0 : index
    %c0_10 = arith.constant 0 : index
    %6 = vector.load %arg2[%c0_8, %c1, %c0_9, %c0_10] : memref<1x4x90x8xbf16, #tpu.memory_space<vmem>>, vector<1x1x72x8xbf16>
    %7 = vector.shape_cast %6 : vector<1x1x72x8xbf16> to vector<72x8xbf16>
    %c1_11 = arith.constant 1 : index
    %c0_12 = arith.constant 0 : index
    %c0_13 = arith.constant 0 : index
    %8 = vector.load %arg3[%c1_11, %c0_12, %c0_13] : memref<9x8x8xbf16, #tpu.memory_space<vmem>>, vector<1x8x8xbf16>
    %9 = vector.shape_cast %8 : vector<1x8x8xbf16> to vector<8x8xbf16>
    %cst_14 = arith.constant dense<0.000000e+00> : vector<72x8xf32>
    %10 = tpu.matmul %7, %9, %cst_14 {dimension_numbers = #tpu.dot_dimension_numbers<[1], [0], [0], [1], [0, 0, 1, 1], [], []>} : vector<72x8xbf16>, vector<8x8xbf16>, vector<72x8xf32> -> vector<72x8xf32>
    %c0_15 = arith.constant 0 : index
    %c0_16 = arith.constant 0 : index
    %11 = vector.load %arg8[%c0_15, %c0_16] : memref<72x8xf32, #tpu.memory_space<vmem>>, vector<72x8xf32>
    %12 = arith.addf %11, %10 : vector<72x8xf32>
    %c0_17 = arith.constant 0 : index
    %c0_18 = arith.constant 0 : index
    %13 = vector.load %arg8[%c0_17, %c0_18] : memref<72x8xf32, #tpu.memory_space<vmem>>, vector<72x8xf32>
    tpu.vector_store %arg8[%c0_17, %c0_18], %12 {strides = array<i32>} : memref<72x8xf32, #tpu.memory_space<vmem>>, vector<72x8xf32>,
    %c0_19 = arith.constant 0 : index
    %c0_20 = arith.constant 0 : index
    %c1_21 = arith.constant 1 : index
    %c0_22 = arith.constant 0 : index
    %14 = vector.load %arg2[%c0_19, %c0_20, %c1_21, %c0_22] : memref<1x4x90x8xbf16, #tpu.memory_space<vmem>>, vector<1x1x72x8xbf16>
    %15 = vector.shape_cast %14 : vector<1x1x72x8xbf16> to vector<72x8xbf16>
    %c2 = arith.constant 2 : index
    %c0_23 = arith.constant 0 : index
    %c0_24 = arith.constant 0 : index
    %16 = vector.load %arg3[%c2, %c0_23, %c0_24] : memref<9x8x8xbf16, #tpu.memory_space<vmem>>, vector<1x8x8xbf16>
    %17 = vector.shape_cast %16 : vector<1x8x8xbf16> to vector<8x8xbf16>
    %cst_25 = arith.constant dense<0.000000e+00> : vector<72x8xf32>
    %18 = tpu.matmul %15, %17, %cst_25 {dimension_numbers = #tpu.dot_dimension_numbers<[1], [0], [0], [1], [0, 0, 1, 1], [], []>} : vector<72x8xbf16>, vector<8x8xbf16>, vector<72x8xf32> -> vector<72x8xf32>
    %c0_26 = arith.constant 0 : index
    %c0_27 = arith.constant 0 : index
    %19 = vector.load %arg8[%c0_26, %c0_27] : memref<72x8xf32, #tpu.memory_space<vmem>>, vector<72x8xf32>
    %20 = arith.addf %19, %18 : vector<72x8xf32>
    %c0_28 = arith.constant 0 : index
    %c0_29 = arith.constant 0 : index
    %21 = vector.load %arg8[%c0_28, %c0_29] : memref<72x8xf32, #tpu.memory_space<vmem>>, vector<72x8xf32>
    tpu.vector_store %arg8[%c0_28, %c0_29], %20 {strides = array<i32>} : memref<72x8xf32, #tpu.memory_space<vmem>>, vector<72x8xf32>,
    %c0_30 = arith.constant 0 : index
    %c2_31 = arith.constant 2 : index
    %c0_32 = arith.constant 0 : index
    %c0_33 = arith.constant 0 : index
    %22 = vector.load %arg2[%c0_30, %c2_31, %c0_32, %c0_33] : memref<1x4x90x8xbf16, #tpu.memory_space<vmem>>, vector<1x1x72x8xbf16>
    %23 = vector.shape_cast %22 : vector<1x1x72x8xbf16> to vector<72x8xbf16>
    %c3 = arith.constant 3 : index
    %c0_34 = arith.constant 0 : index
    %c0_35 = arith.constant 0 : index
    %24 = vector.load %arg3[%c3, %c0_34, %c0_35] : memref<9x8x8xbf16, #tpu.memory_space<vmem>>, vector<1x8x8xbf16>
    %25 = vector.shape_cast %24 : vector<1x8x8xbf16> to vector<8x8xbf16>
    %cst_36 = arith.constant dense<0.000000e+00> : vector<72x8xf32>
    %26 = tpu.matmul %23, %25, %cst_36 {dimension_numbers = #tpu.dot_dimension_numbers<[1], [0], [0], [1], [0, 0, 1, 1], [], []>} : vector<72x8xbf16>, vector<8x8xbf16>, vector<72x8xf32> -> vector<72x8xf32>
    %c0_37 = arith.constant 0 : index
    %c0_38 = arith.constant 0 : index
    %27 = vector.load %arg8[%c0_37, %c0_38] : memref<72x8xf32, #tpu.memory_space<vmem>>, vector<72x8xf32>
    %28 = arith.addf %27, %26 : vector<72x8xf32>
    %c0_39 = arith.constant 0 : index
    %c0_40 = arith.constant 0 : index
    %29 = vector.load %arg8[%c0_39, %c0_40] : memref<72x8xf32, #tpu.memory_space<vmem>>, vector<72x8xf32>
    tpu.vector_store %arg8[%c0_39, %c0_40], %28 {strides = array<i32>} : memref<72x8xf32, #tpu.memory_space<vmem>>, vector<72x8xf32>,
    %c0_41 = arith.constant 0 : index
    %c3_42 = arith.constant 3 : index
    %c0_43 = arith.constant 0 : index
    %c0_44 = arith.constant 0 : index
    %30 = vector.load %arg2[%c0_41, %c3_42, %c0_43, %c0_44] : memref<1x4x90x8xbf16, #tpu.memory_space<vmem>>, vector<1x1x72x8xbf16>
    %31 = vector.shape_cast %30 : vector<1x1x72x8xbf16> to vector<72x8xbf16>
    %c4 = arith.constant 4 : index
    %c0_45 = arith.constant 0 : index
    %c0_46 = arith.constant 0 : index
    %32 = vector.load %arg3[%c4, %c0_45, %c0_46] : memref<9x8x8xbf16, #tpu.memory_space<vmem>>, vector<1x8x8xbf16>
    %33 = vector.shape_cast %32 : vector<1x8x8xbf16> to vector<8x8xbf16>
    %cst_47 = arith.constant dense<0.000000e+00> : vector<72x8xf32>
    %34 = tpu.matmul %31, %33, %cst_47 {dimension_numbers = #tpu.dot_dimension_numbers<[1], [0], [0], [1], [0, 0, 1, 1], [], []>} : vector<72x8xbf16>, vector<8x8xbf16>, vector<72x8xf32> -> vector<72x8xf32>
    %c0_48 = arith.constant 0 : index
    %c0_49 = arith.constant 0 : index
    %35 = vector.load %arg8[%c0_48, %c0_49] : memref<72x8xf32, #tpu.memory_space<vmem>>, vector<72x8xf32>
    %36 = arith.addf %35, %34 : vector<72x8xf32>
    %c0_50 = arith.constant 0 : index
    %c0_51 = arith.constant 0 : index
    %37 = vector.load %arg8[%c0_50, %c0_51] : memref<72x8xf32, #tpu.memory_space<vmem>>, vector<72x8xf32>
    tpu.vector_store %arg8[%c0_50, %c0_51], %36 {strides = array<i32>} : memref<72x8xf32, #tpu.memory_space<vmem>>, vector<72x8xf32>,
    %c0_52 = arith.constant 0 : index
    %c2_53 = arith.constant 2 : index
    %c1_54 = arith.constant 1 : index
    %c0_55 = arith.constant 0 : index
    %38 = vector.load %arg2[%c0_52, %c2_53, %c1_54, %c0_55] : memref<1x4x90x8xbf16, #tpu.memory_space<vmem>>, vector<1x1x72x8xbf16>
    %39 = vector.shape_cast %38 : vector<1x1x72x8xbf16> to vector<72x8xbf16>
    %c5 = arith.constant 5 : index
    %c0_56 = arith.constant 0 : index
    %c0_57 = arith.constant 0 : index
    %40 = vector.load %arg3[%c5, %c0_56, %c0_57] : memref<9x8x8xbf16, #tpu.memory_space<vmem>>, vector<1x8x8xbf16>
    %41 = vector.shape_cast %40 : vector<1x8x8xbf16> to vector<8x8xbf16>
    %cst_58 = arith.constant dense<0.000000e+00> : vector<72x8xf32>
    %42 = tpu.matmul %39, %41, %cst_58 {dimension_numbers = #tpu.dot_dimension_numbers<[1], [0], [0], [1], [0, 0, 1, 1], [], []>} : vector<72x8xbf16>, vector<8x8xbf16>, vector<72x8xf32> -> vector<72x8xf32>
    %c0_59 = arith.constant 0 : index
    %c0_60 = arith.constant 0 : index
    %43 = vector.load %arg8[%c0_59, %c0_60] : memref<72x8xf32, #tpu.memory_space<vmem>>, vector<72x8xf32>
    %44 = arith.addf %43, %42 : vector<72x8xf32>
    %c0_61 = arith.constant 0 : index
    %c0_62 = arith.constant 0 : index
    %45 = vector.load %arg8[%c0_61, %c0_62] : memref<72x8xf32, #tpu.memory_space<vmem>>, vector<72x8xf32>
    tpu.vector_store %arg8[%c0_61, %c0_62], %44 {strides = array<i32>} : memref<72x8xf32, #tpu.memory_space<vmem>>, vector<72x8xf32>,
    %c0_63 = arith.constant 0 : index
    %c0_64 = arith.constant 0 : index
    %c9 = arith.constant 9 : index
    %c0_65 = arith.constant 0 : index
    %46 = vector.load %arg2[%c0_63, %c0_64, %c9, %c0_65] : memref<1x4x90x8xbf16, #tpu.memory_space<vmem>>, vector<1x1x72x8xbf16>
    %47 = vector.shape_cast %46 : vector<1x1x72x8xbf16> to vector<72x8xbf16>
    %c6 = arith.constant 6 : index
    %c0_66 = arith.constant 0 : index
    %c0_67 = arith.constant 0 : index
    %48 = vector.load %arg3[%c6, %c0_66, %c0_67] : memref<9x8x8xbf16, #tpu.memory_space<vmem>>, vector<1x8x8xbf16>
    %49 = vector.shape_cast %48 : vector<1x8x8xbf16> to vector<8x8xbf16>
    %cst_68 = arith.constant dense<0.000000e+00> : vector<72x8xf32>
    %50 = tpu.matmul %47, %49, %cst_68 {dimension_numbers = #tpu.dot_dimension_numbers<[1], [0], [0], [1], [0, 0, 1, 1], [], []>} : vector<72x8xbf16>, vector<8x8xbf16>, vector<72x8xf32> -> vector<72x8xf32>
    %c0_69 = arith.constant 0 : index
    %c0_70 = arith.constant 0 : index
    %51 = vector.load %arg8[%c0_69, %c0_70] : memref<72x8xf32, #tpu.memory_space<vmem>>, vector<72x8xf32>
    %52 = arith.addf %51, %50 : vector<72x8xf32>
    %c0_71 = arith.constant 0 : index
    %c0_72 = arith.constant 0 : index
    %53 = vector.load %arg8[%c0_71, %c0_72] : memref<72x8xf32, #tpu.memory_space<vmem>>, vector<72x8xf32>
    tpu.vector_store %arg8[%c0_71, %c0_72], %52 {strides = array<i32>} : memref<72x8xf32, #tpu.memory_space<vmem>>, vector<72x8xf32>,
    %c0_73 = arith.constant 0 : index
    %c1_74 = arith.constant 1 : index
    %c9_75 = arith.constant 9 : index
    %c0_76 = arith.constant 0 : index
    %54 = vector.load %arg2[%c0_73, %c1_74, %c9_75, %c0_76] : memref<1x4x90x8xbf16, #tpu.memory_space<vmem>>, vector<1x1x72x8xbf16>
    %55 = vector.shape_cast %54 : vector<1x1x72x8xbf16> to vector<72x8xbf16>
    %c7 = arith.constant 7 : index
    %c0_77 = arith.constant 0 : index
    %c0_78 = arith.constant 0 : index
    %56 = vector.load %arg3[%c7, %c0_77, %c0_78] : memref<9x8x8xbf16, #tpu.memory_space<vmem>>, vector<1x8x8xbf16>
    %57 = vector.shape_cast %56 : vector<1x8x8xbf16> to vector<8x8xbf16>
    %cst_79 = arith.constant dense<0.000000e+00> : vector<72x8xf32>
    %58 = tpu.matmul %55, %57, %cst_79 {dimension_numbers = #tpu.dot_dimension_numbers<[1], [0], [0], [1], [0, 0, 1, 1], [], []>} : vector<72x8xbf16>, vector<8x8xbf16>, vector<72x8xf32> -> vector<72x8xf32>
    %c0_80 = arith.constant 0 : index
    %c0_81 = arith.constant 0 : index
    %59 = vector.load %arg8[%c0_80, %c0_81] : memref<72x8xf32, #tpu.memory_space<vmem>>, vector<72x8xf32>
    %60 = arith.addf %59, %58 : vector<72x8xf32>
    %c0_82 = arith.constant 0 : index
    %c0_83 = arith.constant 0 : index
    %61 = vector.load %arg8[%c0_82, %c0_83] : memref<72x8xf32, #tpu.memory_space<vmem>>, vector<72x8xf32>
    tpu.vector_store %arg8[%c0_82, %c0_83], %60 {strides = array<i32>} : memref<72x8xf32, #tpu.memory_space<vmem>>, vector<72x8xf32>,
    %c0_84 = arith.constant 0 : index
    %c0_85 = arith.constant 0 : index
    %c10 = arith.constant 10 : index
    %c0_86 = arith.constant 0 : index
    %62 = vector.load %arg2[%c0_84, %c0_85, %c10, %c0_86] : memref<1x4x90x8xbf16, #tpu.memory_space<vmem>>, vector<1x1x72x8xbf16>
    %63 = vector.shape_cast %62 : vector<1x1x72x8xbf16> to vector<72x8xbf16>
    %c8 = arith.constant 8 : index
    %c0_87 = arith.constant 0 : index
    %c0_88 = arith.constant 0 : index
    %64 = vector.load %arg3[%c8, %c0_87, %c0_88] : memref<9x8x8xbf16, #tpu.memory_space<vmem>>, vector<1x8x8xbf16>
    %65 = vector.shape_cast %64 : vector<1x8x8xbf16> to vector<8x8xbf16>
    %cst_89 = arith.constant dense<0.000000e+00> : vector<72x8xf32>
    %66 = tpu.matmul %63, %65, %cst_89 {dimension_numbers = #tpu.dot_dimension_numbers<[1], [0], [0], [1], [0, 0, 1, 1], [], []>} : vector<72x8xbf16>, vector<8x8xbf16>, vector<72x8xf32> -> vector<72x8xf32>
    %c0_90 = arith.constant 0 : index
    %c0_91 = arith.constant 0 : index
    %67 = vector.load %arg8[%c0_90, %c0_91] : memref<72x8xf32, #tpu.memory_space<vmem>>, vector<72x8xf32>
    %68 = arith.addf %67, %66 : vector<72x8xf32>
    %c0_92 = arith.constant 0 : index
    %c0_93 = arith.constant 0 : index
    %69 = vector.load %arg8[%c0_92, %c0_93] : memref<72x8xf32, #tpu.memory_space<vmem>>, vector<72x8xf32>
    tpu.vector_store %arg8[%c0_92, %c0_93], %68 {strides = array<i32>} : memref<72x8xf32, #tpu.memory_space<vmem>>, vector<72x8xf32>,
    %c0_94 = arith.constant 0 : index
    %c0_95 = arith.constant 0 : index
    %70 = vector.load %arg8[%c0_94, %c0_95] : memref<72x8xf32, #tpu.memory_space<vmem>>, vector<72x8xf32>
    %71 = arith.truncf %70 : vector<72x8xf32> to vector<72x8xbf16>
    %c0_96 = arith.constant 0 : index
    %c0_97 = arith.constant 0 : index
    %c0_98 = arith.constant 0 : index
    %72 = vector.load %arg5[%c0_96, %c0_97, %c0_98] : memref<1x72x8xbf16, #tpu.memory_space<vmem>>, vector<1x72x8xbf16>
    %73 = vector.shape_cast %72 : vector<1x72x8xbf16> to vector<72x8xbf16>
    %74 = vector.shape_cast %71 : vector<72x8xbf16> to vector<1x72x8xbf16>
    tpu.vector_store %arg5[%c0_96, %c0_97, %c0_98], %74 {strides = array<i32>} : memref<1x72x8xbf16, #tpu.memory_space<vmem>>, vector<1x72x8xbf16>,
    %c0_99 = arith.constant 0 : index
    %c0_100 = arith.constant 0 : index
    %75 = vector.load %arg1[%c0_99, %c0_100] : memref<72x1xf32, #tpu.memory_space<vmem>>, vector<72x1xf32>
    %76 = vector.broadcast %75 : vector<72x1xf32> to vector<72x8xf32>
    %77 = arith.mulf %70, %76 : vector<72x8xf32>
    %cst_101 = arith.constant dense<0.000000e+00> : vector<8xf32>
    %78 = vector.multi_reduction <add>, %77, %cst_101 [0] : vector<72x8xf32> to vector<8xf32>
    %79 = vector.shape_cast %78 : vector<8xf32> to vector<1x8xf32>
    %c0_102 = arith.constant 0 : index
    %c0_103 = arith.constant 0 : index
    %c0_104 = arith.constant 0 : index
    %80 = vector.load %arg7[%c0_102, %c0_103, %c0_104] : memref<1x4x8xf32, #tpu.memory_space<vmem>>, vector<1x1x8xf32>
    %81 = vector.shape_cast %80 : vector<1x1x8xf32> to vector<1x8xf32>
    %82 = vector.shape_cast %79 : vector<1x8xf32> to vector<1x1x8xf32>
    tpu.vector_store %arg7[%c0_102, %c0_103, %c0_104], %82 {strides = array<i32>} : memref<1x4x8xf32, #tpu.memory_space<vmem>>, vector<1x1x8xf32>,
    %83 = arith.mulf %77, %70 : vector<72x8xf32>
    %cst_105 = arith.constant dense<0.000000e+00> : vector<8xf32>
    %84 = vector.multi_reduction <add>, %83, %cst_105 [0] : vector<72x8xf32> to vector<8xf32>
    %85 = vector.shape_cast %84 : vector<8xf32> to vector<1x8xf32>
    %c0_106 = arith.constant 0 : index
    %c1_107 = arith.constant 1 : index
    %c0_108 = arith.constant 0 : index
    %86 = vector.load %arg7[%c0_106, %c1_107, %c0_108] : memref<1x4x8xf32, #tpu.memory_space<vmem>>, vector<1x1x8xf32>
    %87 = vector.shape_cast %86 : vector<1x1x8xf32> to vector<1x8xf32>
    %88 = vector.shape_cast %85 : vector<1x8xf32> to vector<1x1x8xf32>
    tpu.vector_store %arg7[%c0_106, %c1_107, %c0_108], %88 {strides = array<i32>} : memref<1x4x8xf32, #tpu.memory_space<vmem>>, vector<1x1x8xf32>,
    %c0_109 = arith.constant 0 : index
    %c3_110 = arith.constant 3 : index
    %c0_111 = arith.constant 0 : index
    %c0_112 = arith.constant 0 : index
    %89 = vector.load %arg2[%c0_109, %c3_110, %c0_111, %c0_112] : memref<1x4x90x8xbf16, #tpu.memory_space<vmem>>, vector<1x1x72x8xbf16>
    %90 = vector.shape_cast %89 : vector<1x1x72x8xbf16> to vector<72x8xbf16>
    %c0_113 = arith.constant 0 : index
    %c0_114 = arith.constant 0 : index
    %91 = vector.load %arg4[%c0_113, %c0_114] : memref<8x8xbf16, #tpu.memory_space<vmem>>, vector<8x8xbf16>
    %cst_115 = arith.constant dense<0.000000e+00> : vector<72x8xf32>
    %92 = tpu.matmul %90, %91, %cst_115 {dimension_numbers = #tpu.dot_dimension_numbers<[1], [0], [0], [1], [0, 0, 1, 1], [], []>} : vector<72x8xbf16>, vector<8x8xbf16>, vector<72x8xf32> -> vector<72x8xf32>
    %93 = arith.truncf %92 : vector<72x8xf32> to vector<72x8xbf16>
    %c0_116 = arith.constant 0 : index
    %c0_117 = arith.constant 0 : index
    %c0_118 = arith.constant 0 : index
    %94 = vector.load %arg6[%c0_116, %c0_117, %c0_118] : memref<1x72x8xbf16, #tpu.memory_space<vmem>>, vector<1x72x8xbf16>
    %95 = vector.shape_cast %94 : vector<1x72x8xbf16> to vector<72x8xbf16>
    %96 = vector.shape_cast %93 : vector<72x8xbf16> to vector<1x72x8xbf16>
    tpu.vector_store %arg6[%c0_116, %c0_117, %c0_118], %96 {strides = array<i32>} : memref<1x72x8xbf16, #tpu.memory_space<vmem>>, vector<1x72x8xbf16>,
    %97 = vector.broadcast %75 : vector<72x1xf32> to vector<72x8xf32>
    %98 = arith.mulf %92, %97 : vector<72x8xf32>
    %cst_119 = arith.constant dense<0.000000e+00> : vector<8xf32>
    %99 = vector.multi_reduction <add>, %98, %cst_119 [0] : vector<72x8xf32> to vector<8xf32>
    %100 = vector.shape_cast %99 : vector<8xf32> to vector<1x8xf32>
    %c0_120 = arith.constant 0 : index
    %c2_121 = arith.constant 2 : index
    %c0_122 = arith.constant 0 : index
    %101 = vector.load %arg7[%c0_120, %c2_121, %c0_122] : memref<1x4x8xf32, #tpu.memory_space<vmem>>, vector<1x1x8xf32>
    %102 = vector.shape_cast %101 : vector<1x1x8xf32> to vector<1x8xf32>
    %103 = vector.shape_cast %100 : vector<1x8xf32> to vector<1x1x8xf32>
    tpu.vector_store %arg7[%c0_120, %c2_121, %c0_122], %103 {strides = array<i32>} : memref<1x4x8xf32, #tpu.memory_space<vmem>>, vector<1x1x8xf32>,
    %104 = arith.mulf %98, %92 : vector<72x8xf32>
    %cst_123 = arith.constant dense<0.000000e+00> : vector<8xf32>
    %105 = vector.multi_reduction <add>, %104, %cst_123 [0] : vector<72x8xf32> to vector<8xf32>
    %106 = vector.shape_cast %105 : vector<8xf32> to vector<1x8xf32>
    %c0_124 = arith.constant 0 : index
    %c3_125 = arith.constant 3 : index
    %c0_126 = arith.constant 0 : index
    %107 = vector.load %arg7[%c0_124, %c3_125, %c0_126] : memref<1x4x8xf32, #tpu.memory_space<vmem>>, vector<1x1x8xf32>
    %108 = vector.shape_cast %107 : vector<1x1x8xf32> to vector<1x8xf32>
    %109 = vector.shape_cast %106 : vector<1x8xf32> to vector<1x1x8xf32>
    tpu.vector_store %arg7[%c0_124, %c3_125, %c0_126], %109 {strides = array<i32>} : memref<1x4x8xf32, #tpu.memory_space<vmem>>, vector<1x1x8xf32>,
    return
  }
  func.func @transform_0(%arg0: i32) -> (i32, i32) {
    %c0_i32 = arith.constant 0 : i32
    %c0_i32_0 = arith.constant 0 : i32
    %c0_i32_1 = arith.constant 0 : i32
    return %c0_i32, %c0_i32_0 : i32, i32
  }
  func.func @transform_1(%arg0: i32) -> (i32, i32, i32, i32) {
    %c0_i32 = arith.constant 0 : i32
    %c0_i32_0 = arith.constant 0 : i32
    %c0_i32_1 = arith.constant 0 : i32
    %c0_i32_2 = arith.constant 0 : i32
    return %arg0, %c0_i32, %c0_i32_0, %c0_i32_1 : i32, i32, i32, i32
  }
  func.func @transform_2(%arg0: i32) -> (i32, i32, i32) {
    %c0_i32 = arith.constant 0 : i32
    %c0_i32_0 = arith.constant 0 : i32
    %c0_i32_1 = arith.constant 0 : i32
    %c0_i32_2 = arith.constant 0 : i32
    return %c0_i32, %c0_i32_0, %c0_i32_1 : i32, i32, i32
  }
  func.func @transform_3(%arg0: i32) -> (i32, i32) {
    %c0_i32 = arith.constant 0 : i32
    %c0_i32_0 = arith.constant 0 : i32
    %c0_i32_1 = arith.constant 0 : i32
    return %c0_i32, %c0_i32_0 : i32, i32
  }
  func.func @transform_4(%arg0: i32) -> (i32, i32, i32) {
    %c0_i32 = arith.constant 0 : i32
    %c0_i32_0 = arith.constant 0 : i32
    %c0_i32_1 = arith.constant 0 : i32
    return %arg0, %c0_i32, %c0_i32_0 : i32, i32, i32
  }
  func.func @transform_5(%arg0: i32) -> (i32, i32, i32) {
    %c0_i32 = arith.constant 0 : i32
    %c0_i32_0 = arith.constant 0 : i32
    %c0_i32_1 = arith.constant 0 : i32
    return %arg0, %c0_i32, %c0_i32_0 : i32, i32, i32
  }
  func.func @transform_6(%arg0: i32) -> (i32, i32, i32) {
    %c0_i32 = arith.constant 0 : i32
    %c0_i32_0 = arith.constant 0 : i32
    %c0_i32_1 = arith.constant 0 : i32
    return %arg0, %c0_i32, %c0_i32_0 : i32, i32, i32
  }
}

</mosaic_0001>

<bundles_post_ra>
// kernel: conv_block_forward_nhwc.3
= control target key start
LH: loop header
LB: loop body
LE: loop exit
PB: predicated region body
PF: predicated region fallthrough
CT: control target
= control target key end

     0   :  { %8 = vsyncpa [#allocation3], 0  ;;  %s1131_s0 = inlined_call_operand.hbm [shape: bf16[2,72,8], index: 0, kind: input, shape index: {}]   ;;  %s1132_s1 = inlined_call_operand.hbm [shape: bf16[2,72,8], index: 1, kind: input, shape index: {}]   ;;  %s1133_s2 = inlined_call_operand.hbm [shape: f32[4,8], index: 2, kind: input, shape index: {}]   ;;  %s1134_s3 = inlined_call_operand.hbm [shape: f32[2,72,8], index: 3, kind: output, shape index: {}]  }
   0x1   :  { %10 = vsyncpa [#allocation3 + $0x1], 0 }
   0x2   :  { %11 = vsyncpa [#allocation6], 0 }
   0x3   :  { %13 = vsyncpa [#allocation6 + $0x1], 0 }
   0x4   :  { %14 = vsyncpa [#allocation4], 0 }
   0x5   :  { %16 = vsyncpa [#allocation4 + $0x1], 0  ;;  %s798_s12 = smov 0   ;;  %s800_s13 = smov 0  }
   0x6   :  { %s802_s14 = smov 0   ;;  %s804_s15 = smov 0  }
   0x7 LB: > { %s819_s16 = sadd.s32 4294967295, %s768_s15   ;;  %s480_s17 = sadd.s32 4294967294, %s768_s15   ;;  %s768_s15 = sphi %s804_s15, %s1159_s15   ;;  %s764_s14 = sphi %s802_s14, %s1158_s14   ;;  %s760_s13 = sphi %s800_s13, %s1157_s13   ;;  %s756_s12 = sphi %s798_s12, %s1156_s12  }
   0x8   : > { %s823_s18 = sadd.s32 1, %s768_s15   ;;  %s29_s19 = sadd.s32 1, %s764_s14 }
   0x9   : > { %s26_s20 = ssub.s32 %s768_s15, %s823_s18  ;;  %p36_p0 = scmp.ne.s32.totalorder %s764_s14, %s760_s13 }
   0xa   : > { %p27_p1 = scmp.eq.s32.totalorder %s26_s20, 0  ;;  %p37_p2 = scmp.eq.s32.totalorder %s768_s15, 0 }
   0xb   : > { %p42_p3 = scmp.ne.s32.totalorder %s760_s13, %s756_s12  ;;  %p1135_p4 = scmp.eq.s32.totalorder %s819_s16, 0 }
   0xc   : > { %s835_s21 = scalar_select %p27_p1, %s764_s14, %s29_s19  }
   0xd   : > { %p837_p5 = por %p37_p2, %p36_p0  ;;  %p843_p6 = por %p1135_p4, %p42_p3 }
   0xe   : > { %p113_p7 = scmp.eq.s32.totalorder %s819_s16, 1  ;;  %p119_p8 = scmp.eq.s32.totalorder %s480_s17, 1 }
   0xf   : > { %s1141_s23 = scalar_select %p843_p6, 1, 0 }
  0x10   : > { %p481_p9 = scmp.ge.s32.totalorder %s768_s15, 1  ;;  %p126_p10 = scmp.lt.s32.totalorder %s768_s15, 3 }
  0x11   : > { %p850_p11 = por %p113_p7, %p36_p0  ;;  %p854_p12 = por %p119_p8, %p42_p3 }
  0x12   : > { %p858_p13 = pnand %p481_p9, %p126_p10  ;;  %s770_s27 = smov [#allocation7]  }
  0x13   : > { %s1142_s24 = scalar_select %p850_p11, 1, 0 }
  0x14   : > { %s1143_s25 = scalar_select %p854_p12, 1, 0 }
  0x15   : > { %s1144_s26 = scalar_select %p858_p13, 1, 0 }
  0x16   : > { %p550_p2 = pneg %p858_p13  ;;  %s139_s28 = sshll.u32 %s770_s27, 4  ;;  %s140_s28 = int_to_ptr.vmem [resolvable:$true] %s139_s28 }
  0x17   : > { %p566_p4 = scmp.lt.s32.totalorder %s768_s15, 2  ;;  %p1145_p0 = scmp.eq.s32.totalorder %s819_s16, 0 }
  0x18   : > { %s150_s30 = sand.u32 1, %s764_s14   ;;  %s606_s8 = scalar_lea.hbm %s1133_s2, 64 }
  0x19   : > { %p868_p7 = pnand %p550_p2, %p1145_p0  ;;  %p875_p3 = pnand %p566_p4, %p837_p5 }
  0x1a   : > { %s879_s5 = smul.u32 36, %s150_s30  ;;  %p607_p8 = scmp.ne.s32.totalorder %s1133_s2, %s606_s8 }
  0x1b   : > { %s1147_s4 = scalar_select %p875_p3, 1, 0 }
  0x1c   : > { %p608_p9 = pneg %p868_p7  ;;  %p613_p4 = scmp.lt.u32.totalorder %s606_s8, %s1133_s2 }
  0x1e   : > { %p609_p10 = pnand %p608_p9, %p607_p8 }
  0x20   : > { %p610_p2 = pneg %p609_p10 }
  0x22   : > { %p615_p5 = pnand %p613_p4, %p610_p2 }
  0x24   : > { %618 = shalt.err (!%p615_p5)
}
  0x25   : > { %s619_s19 = scalar_lea.vmem %s140_s28, 64  ;;  %p627_p11 = scmp.lt.s32.totalorder %s140_s28, %s140_s28 }
  0x26   : > { %p620_p0 = scmp.ne.s32.totalorder %s140_s28, %s619_s19  ;;  %p628_p6 = scmp.lt.s32.totalorder %s619_s19, %s619_s19 }
  0x28   : > { %p622_p1 = pnand %p620_p0, %p608_p9  ;;  %p629_p13 = por %p628_p6, %p627_p11 }
  0x2a   : > { %p623_p12 = pneg %p622_p1 }
  0x2c   : > { %p630_p3 = pnand %p629_p13, %p623_p12 }
  0x2e   : > { %633 = shalt.err (!%p630_p3)
}
  0x2f   : > { %553 = dma.hbm_to_vmem [thread:$0]  (!%p868_p7), %s1133_s2, 64, %s140_s28, [#allocation6]  }
  0x30   : > { %s534_s27 = smul.u32 576, %s768_s15  ;;  %s154_s6 = scalar_lea.vmem [#allocation2], %s879_s5 }
  0x31   : > { %s161_s7 = sshll.u32 %s154_s6, 4  ;;  %s908_s29 = scalar_lea.sflag [#allocation3], %s150_s30  ;;  %s899_s7 = int_to_ptr.vmem [resolvable:$true] %s161_s7 }
  0x32   : > { %s906_s10 = scalar_lea.hbm %s1131_s0, %s534_s27  ;;  %p1148_p11 = scmp.ne.s32.totalorder %s1147_s4, 0 }
  0x33   : > { %s634_s11 = scalar_lea.hbm %s906_s10, 576  ;;  %s639_s19 = scalar_lea.hbm %s1131_s0, 1152 }
  0x34   : > { %p635_p6 = scmp.ne.s32.totalorder %s906_s10, %s634_s11  ;;  %p636_p12 = pneg %p1148_p11 }
  0x35   : > { %p640_p7 = scmp.lt.u32.totalorder %s906_s10, %s1131_s0  ;;  %p641_p3 = scmp.lt.u32.totalorder %s639_s19, %s634_s11 }
  0x36   : > { %p637_p13 = pnand %p636_p12, %p635_p6  ;;  %p643_p9 = scmp.lt.u32.totalorder %s634_s11, %s906_s10 }
  0x37   : > { %p642_p8 = por %p641_p3, %p640_p7 }
  0x38   : > { %p638_p1 = pneg %p637_p13 }
  0x39   : > { %p644_p10 = por %p643_p9, %p642_p8 }
  0x3b   : > { %p645_p2 = pnand %p644_p10, %p638_p1 }
  0x3d   : > { %648 = shalt.err (!%p645_p2)
}
  0x3e   : > { %s649_s30 = scalar_lea.vmem %s899_s7, 576  ;;  %s771_s6 = smov [#allocation2]  }
  0x3f   : > { %p650_p4 = scmp.ne.s32.totalorder %s899_s7, %s649_s30  ;;  %s654_s8 = sshll.u32 %s771_s6, 4  ;;  %s655_s8 = int_to_ptr.vmem [resolvable:$false] %s654_s8 }
  0x40   : > { %s656_s9 = scalar_lea.vmem %s655_s8, 1152  ;;  %p657_p6 = scmp.lt.s32.totalorder %s899_s7, %s655_s8 }
  0x41   : > { %p652_p5 = pnand %p650_p4, %p636_p12  ;;  %p658_p13 = scmp.lt.s32.totalorder %s656_s9, %s649_s30 }
  0x43   : > { %p653_p0 = pneg %p652_p5  ;;  %p659_p7 = por %p658_p13, %p657_p6 }
  0x45   : > { %p660_p3 = pnand %p659_p7, %p653_p0 }
  0x47   : > { %663 = shalt.err (!%p660_p3)
}
  0x48   : > { %s772_s11 = smov 64   ;;  %s773_s28 = smov 4  }
  0x49   : > { %557 = dma.hbm_to_vmem [thread:$0]  (!%p1148_p11), %s906_s10, 576, %s899_s7, %s908_s29, %s772_s11, %s772_s11, %s773_s28  }
  0x4a   : > { %s171_s17 = sand.u32 1, %s768_s15   ;;  %s945_s22 = scalar_lea.hbm %s1132_s1, %s534_s27 }
  0x4b   : > { %s175_s30 = scalar_lea.vmem [#allocation5], %s879_s5  ;;  %s950_s8 = scalar_lea.sflag [#allocation6], %s171_s17 }
  0x4c   : > { %s182_s6 = sshll.u32 %s175_s30, 4  ;;  %s664_s9 = scalar_lea.hbm %s945_s22, 576  ;;  %s948_s6 = int_to_ptr.vmem [resolvable:$true] %s182_s6 }
  0x4d   : > { %p665_p1 = scmp.ne.s32.totalorder %s945_s22, %s664_s9  ;;  %s669_s27 = scalar_lea.hbm %s1132_s1, 1152 }
  0x4e   : > { %p670_p10 = scmp.lt.u32.totalorder %s945_s22, %s1132_s1  ;;  %p671_p2 = scmp.lt.u32.totalorder %s669_s27, %s664_s9 }
  0x4f   : > { %p667_p8 = pnand %p665_p1, %p636_p12  ;;  %p673_p5 = scmp.lt.u32.totalorder %s664_s9, %s945_s22 }
  0x50   : > { %p672_p4 = por %p671_p2, %p670_p10 }
  0x51   : > { %p668_p9 = pneg %p667_p8 }
  0x52   : > { %p674_p0 = por %p673_p5, %p672_p4 }
  0x54   : > { %p675_p6 = pnand %p674_p0, %p668_p9 }
  0x56   : > { %678 = shalt.err (!%p675_p6)
}
  0x57   : > { %s679_s5 = scalar_lea.vmem %s948_s6, 576  ;;  %s774_s17 = smov [#allocation5]  }
  0x58   : > { %p680_p13 = scmp.ne.s32.totalorder %s948_s6, %s679_s5  ;;  %s684_s20 = sshll.u32 %s774_s17, 4  ;;  %s685_s20 = int_to_ptr.vmem [resolvable:$false] %s684_s20 }
  0x59   : > { %s686_s30 = scalar_lea.vmem %s685_s20, 1152  ;;  %p687_p1 = scmp.lt.s32.totalorder %s948_s6, %s685_s20 }
  0x5a   : > { %p682_p7 = pnand %p680_p13, %p636_p12  ;;  %p688_p8 = scmp.lt.s32.totalorder %s686_s30, %s679_s5 }
  0x5c   : > { %p683_p3 = pneg %p682_p7  ;;  %p689_p10 = por %p688_p8, %p687_p1 }
  0x5e   : > { %p690_p2 = pnand %p689_p10, %p683_p3 }
  0x60   : > { %693 = shalt.err (!%p690_p2)
}
  0x61   : > { %560 = dma.hbm_to_vmem [thread:$0]  (!%p1148_p11), %s945_s22, 576, %s948_s6, %s950_s8, %s772_s11, %s772_s11, %s773_s28  }
  0x62   : > { %p1149_p12 = scmp.ne.s32.totalorder %s1144_s26, 0 }
  0x63   : > { %s982_s9 = sand.u32 (!%p1149_p12), 1, %s760_s13   ;;  %p1150_p9 = scmp.ne.s32.totalorder (!%p1149_p12), %s1141_s23, 0 }
  0x64   : > { %194 = sbr.rel (%p1149_p12) target bundleno = 155 (0x9b), region = 32  ;;  %s197_s10 = scalar_lea.sflag (!%p1149_p12), [#allocation3], %s982_s9 }
  0x65   : > { %s537_s7 = smul.u32 (!%p1149_p12), 36, %s982_s9 }
  0x67   : > { %s986_s27 = scalar_lea.vmem (!%p1149_p12), [#allocation2], %s537_s7 }
  0x6b   : > { %739 = dma.done.wait (%p1150_p9), %s197_s10, 576  }
  0x6c   : > { %741 = vsyncadd (%p1150_p9), %s197_s10, 4294966720  ;;  %s205_s4 = sand.u32 1, %s819_s16   ;;  %s993_s11 = scalar_lea.vmem [#allocation5], %s537_s7 }
  0x6d   : > { %s206_s26 = scalar_lea.sflag [#allocation6], %s205_s4 }
  0x6e   : > { %743 = dma.done.wait (%p1150_p9), %s206_s26, 576  }
  0x6f   : > { %745 = vsyncadd (%p1150_p9), %s206_s26, 4294966720  ;;  %p1151_p11 = scmp.eq.s32.totalorder %s819_s16, 0 }
  0x71   : > { %747 = dma.done.wait (%p1151_p11), [#allocation6], 64   ;;  %p1152_p4 = pmov %p1151_p11 }
  0x72   : > { %v1003_v0 = vld [vmem:[#allocation7] ss:$0 sm:$0xff]  ;;  %v1005_v1 = vld [vmem:[#allocation7 + $0x2] ss:$0 sm:$0xff]  ;;  %v496_v2 = vld [vmem:[%s986_s27] sm:$0xff]   ;;  %vm351_vm0 = vcmask 64512  }
  0x73   : > { %749 = vsyncadd (%p1152_p4), [#allocation6], 4294967232  ;;  %v512_v3 = vld [vmem:[%s993_s11] sm:$0xff]   ;;  %v497_v4 = vunpack.c.l.bf16 %v496_v2  ;;  %v498_v6 = vunpack.c.h.bf16 %v496_v2  ;;  %v530_v9 = vld [vmem:[%s993_s11 + $0x8] sm:$0xff]   ;;  %s538_s23 = smul.u32 72, %s982_s9  ;;  %p1153_p0 = scmp.ne.s32.totalorder %s1142_s24, 0 }
  0x74   : > { %v513_v5 = vunpack.c.l.bf16 %v512_v3  ;;  %v514_v7 = vunpack.c.h.bf16 %v512_v3  ;;  %v527_v8 = vld [vmem:[%s986_s27 + $0x8] sm:$0xff]   ;;  %v517_v12 = vunpack.c.l.bf16 %v530_v9  ;;  %v518_v14 = vunpack.c.h.bf16 %v530_v9  ;;  %v528_v15 = vld [vmem:[%s986_s27 + $0x10] sm:$0xff]   ;;  %v531_v16 = vld [vmem:[%s993_s11 + $0x10] sm:$0xff]   ;;  %s539_s22 = smul.u32 1152, %s819_s16  ;;  %s362_s16 = scalar_lea.sflag [#allocation4], %s982_s9 }
  0x75   : > { %v1011_v10 = vld [vmem:[#allocation7 + $0x1] ss:$0 sm:$0xff]  ;;  %v501_v11 = vunpack.c.l.bf16 %v527_v8  ;;  %v502_v13 = vunpack.c.h.bf16 %v527_v8  ;;  %v267_v17 = vmul.f32 %v497_v4, %v1003_v0  ;;  %v268_v19 = vmul.f32 %v498_v6, %v1003_v0  ;;  %v1026_v29 = vld [vmem:[#allocation7 + $0x3] ss:$0 sm:$0xff]  ;;  %v529_v34 = vld [vmem:[%s986_s27 + $0x18] sm:$0xff]   ;;  %s1048_s28 = scalar_lea.vmem [#allocation8], %s538_s23 }
  0x76   : > { %v311_v18 = vmul.f32 %v513_v5, %v1005_v1  ;;  %v312_v20 = vmul.f32 %v514_v7, %v1005_v1  ;;  %v313_v22 = vmul.f32 %v517_v12, %v1005_v1  ;;  %v314_v24 = vmul.f32 %v518_v14, %v1005_v1  ;;  %v532_v39 = vld [vmem:[%s993_s11 + $0x18] sm:$0xff]   ;;  %v297_v57 = vld [vmem:[%s993_s11 + $0x20] sm:$0xf]  ;;  %s375_s6 = sshll.u32 %s1048_s28, 4  ;;  %s1083_s19 = scalar_lea.hbm %s1134_s3, %s539_s22  ;;  %s1078_s6 = int_to_ptr.vmem [resolvable:$true] %s375_s6 }
  0x77   : > { %v269_v21 = vmul.f32 %v501_v11, %v1003_v0  ;;  %v270_v23 = vmul.f32 %v502_v13, %v1003_v0  ;;  %v280_v25 = vadd.f32 %v1011_v10, %v267_v17  ;;  %v281_v26 = vadd.f32 %v1011_v10, %v268_v19  ;;  %v253_v56 = vld [vmem:[%s986_s27 + $0x20] sm:$0xf]  ;;  %s694_s5 = scalar_lea.vmem %s1078_s6, 1152  ;;  %s775_s17 = smov [#allocation8]  }
  0x78   : > { %v505_v27 = vunpack.c.l.bf16 %v528_v15  ;;  %v521_v28 = vunpack.c.l.bf16 %v531_v16  ;;  %v506_v32 = vunpack.c.h.bf16 %v528_v15  ;;  %v522_v33 = vunpack.c.h.bf16 %v531_v16  ;;  %p695_p5 = scmp.ne.s32.totalorder %s1078_s6, %s694_s5  ;;  %s698_s20 = sshll.u32 %s775_s17, 4  ;;  %s699_s20 = int_to_ptr.vmem [resolvable:$false] %s698_s20 }
  0x79   : > { %v282_v30 = vadd.f32 %v1011_v10, %v269_v21  ;;  %v283_v31 = vadd.f32 %v1011_v10, %v270_v23  ;;  %v320_v35 = vadd.f32 %v311_v18, %v280_v25  ;;  %v321_v36 = vadd.f32 %v312_v20, %v281_v26  ;;  %s700_s30 = scalar_lea.vmem %s699_s20, 2304  ;;  %p701_p7 = scmp.lt.s32.totalorder %s1078_s6, %s699_s20 }
  0x7a   : > { %v271_v37 = vmul.f32 %v505_v27, %v1003_v0  ;;  %v315_v38 = vmul.f32 %v521_v28, %v1005_v1  ;;  %v272_v42 = vmul.f32 %v506_v32, %v1003_v0  ;;  %v316_v43 = vmul.f32 %v522_v33, %v1005_v1  ;;  %p696_p6 = pnand %p695_p5, %p1153_p0  ;;  %p702_p3 = scmp.lt.s32.totalorder %s700_s30, %s694_s5 }
  0x7b   : > { %v322_v40 = vadd.f32 %v313_v22, %v282_v30  ;;  %v323_v41 = vadd.f32 %v314_v24, %v283_v31  ;;  %v333_v44 = vadd.f32 %v1026_v29, %v320_v35  ;;  %v334_v45 = vadd.f32 %v1026_v29, %v321_v36 }
  0x7c   : > { %v284_v46 = vadd.f32 %v1011_v10, %v271_v37  ;;  %v509_v47 = vunpack.c.l.bf16 %v529_v34  ;;  %v285_v50 = vadd.f32 %v1011_v10, %v272_v42  ;;  %v525_v51 = vunpack.c.l.bf16 %v532_v39  ;;  %p697_p13 = pneg %p696_p6  ;;  %p703_p1 = por %p702_p3, %p701_p7 }
  0x7d   : > { %v335_v48 = vadd.f32 %v1026_v29, %v322_v40  ;;  %v336_v49 = vadd.f32 %v1026_v29, %v323_v41  ;;  %v342_v52 = vmax.f32 %v333_v44, 0.0  ;;  %v343_v53 = vmax.f32 %v334_v45, 0.0 }
  0x7e   : > { %v324_v54 = vadd.f32 %v315_v38, %v284_v46  ;;  %v273_v55 = vmul.f32 %v509_v47, %v1003_v0  ;;  %v325_v60 = vadd.f32 %v316_v43, %v285_v50  ;;  %v317_v61 = vmul.f32 %v525_v51, %v1005_v1  ;;  %p704_p8 = pnand %p703_p1, %p697_p13 }
  0x7f   : > { %v344_v58 = vmax.f32 %v335_v48, 0.0  ;;  %v345_v59 = vmax.f32 %v336_v49, 0.0  ;;  %352 = vst.msk [vmem:[%s1048_s28] sm:$0xff] %vm351_vm0, %v342_v52  ;;  %353 = vst.msk [vmem:[%s1048_s28 + $0x8] sm:$0xff] %vm351_vm0, %v343_v53  ;;  %v510_v2 = vunpack.c.h.bf16 %v529_v34  ;;  %v526_v3 = vunpack.c.h.bf16 %v532_v39 }
  0x80   : > { %v337_v62 = vadd.f32 %v1026_v29, %v324_v54  ;;  %v286_v63 = vadd.f32 %v1011_v10, %v273_v55  ;;  %v338_v4 = vadd.f32 %v1026_v29, %v325_v60  ;;  %v262_v5 = vunpack.c.l.bf16 %v253_v56 }
  0x81   : > { %354 = vst.msk [vmem:[%s1048_s28 + $0x10] sm:$0xff] %vm351_vm0, %v344_v58  ;;  %355 = vst.msk [vmem:[%s1048_s28 + $0x18] sm:$0xff] %vm351_vm0, %v345_v59  ;;  %v306_v6 = vunpack.c.l.bf16 %v297_v57  ;;  %v274_v9 = vmul.f32 %v510_v2, %v1003_v0  ;;  %v318_v11 = vmul.f32 %v526_v3, %v1005_v1 }
  0x82   : > { %v346_v7 = vmax.f32 %v337_v62, 0.0  ;;  %v326_v8 = vadd.f32 %v317_v61, %v286_v63  ;;  %v347_v12 = vmax.f32 %v338_v4, 0.0  ;;  %v275_v13 = vmul.f32 %v1003_v0, %v262_v5 }
  0x83   : > { %v319_v14 = vmul.f32 %v1005_v1, %v306_v6  ;;  %v287_v16 = vadd.f32 %v1011_v10, %v274_v9 }
  0x84   : > { %356 = vst.msk [vmem:[%s1048_s28 + $0x20] sm:$0xff] %vm351_vm0, %v346_v7  ;;  %v339_v15 = vadd.f32 %v1026_v29, %v326_v8  ;;  %357 = vst.msk [vmem:[%s1048_s28 + $0x28] sm:$0xff] %vm351_vm0, %v347_v12  ;;  %v288_v17 = vadd.f32 %v1011_v10, %v275_v13 }
  0x85   : > { %v327_v19 = vadd.f32 %v318_v11, %v287_v16 }
  0x86   : > { %v348_v18 = vmax.f32 %v339_v15, 0.0  ;;  %v328_v20 = vadd.f32 %v319_v14, %v288_v17 }
  0x87   : > { %v340_v0 = vadd.f32 %v1026_v29, %v327_v19 }
  0x88   : > { %358 = vst.msk [vmem:[%s1048_s28 + $0x30] sm:$0xff] %vm351_vm0, %v348_v18  ;;  %v341_v1 = vadd.f32 %v1026_v29, %v328_v20 }
  0x89   : > { %v349_v21 = vmax.f32 %v340_v0, 0.0 }
  0x8a   : > { %v350_v22 = vmax.f32 %v341_v1, 0.0 }
  0x8b   : > { %359 = vst.msk [vmem:[%s1048_s28 + $0x38] sm:$0xff] %vm351_vm0, %v349_v21 }
  0x8c   : > { %360 = vst.msk [vmem:[%s1048_s28 + $0x40] sm:$0xff] %vm351_vm0, %v350_v22 }
  0x8d   : > { %707 = shalt.err (!%p704_p8)
}
  0x8e   : > { %s708_s7 = scalar_lea.hbm %s1083_s19, 1152  ;;  %s712_s4 = scalar_lea.hbm %s1134_s3, 2304 }
  0x8f   : > { %p709_p10 = scmp.ne.s32.totalorder %s1083_s19, %s708_s7  ;;  %p713_p9 = scmp.lt.u32.totalorder %s1083_s19, %s1134_s3 }
  0x90   : > { %p714_p11 = scmp.lt.u32.totalorder %s712_s4, %s708_s7  ;;  %p716_p5 = scmp.lt.u32.totalorder %s708_s7, %s1083_s19 }
  0x91   : > { %p710_p2 = pnand %p709_p10, %p1153_p0 }
  0x92   : > { %p715_p4 = por %p714_p11, %p713_p9 }
  0x93   : > { %p711_p12 = pneg %p710_p2 }
  0x94   : > { %p717_p6 = por %p716_p5, %p715_p4 }
  0x96   : > { %p718_p13 = pnand %p717_p6, %p711_p12 }
  0x98   : > { %721 = shalt.err (!%p718_p13)
}
  0x99   : > { %s776_s23 = smov 128   ;;  %s777_s28 = smov 8  }
  0x9a   : > { %548 = dma.vmem_to_hbm [thread:$0]  (%p1153_p0), %s1078_s6, 1152, %s1083_s19, %s362_s16, %s776_s23, %s776_s23, %s777_s28  }
  0x9b PF: > { %s390_s22 = sand.u32 1, %s756_s12   ;;  %p1154_p7 = scmp.ne.s32.totalorder %s1143_s25, 0 }
  0x9c   : > { %p1155_p3 = scmp.ge.s32.totalorder %s768_s15, 2  ;;  %s391_s8 = scalar_lea.sflag [#allocation4], %s390_s22 }
  0x9e   : > { %p562_p1 = pnand %p1155_p3, %p1154_p7 }
  0xa0   : > { %751 = dma.done.wait (!%p562_p1), %s391_s8, 1152  }
  0xa1   : > { %753 = vsyncadd (!%p562_p1), %s391_s8, 4294966144  ;;  %p19_p8 = scmp.ge.s32.totalorder %s823_s18, 4   ;;  %s1156_s12 = smov %s760_s13 }
  0xa2   : > { %s1157_s13 = smov %s764_s14  ;;  %s1158_s14 = smov %s835_s21 }
  0xa3   : > { %s1159_s15 = smov %s823_s18  ;;  %21 = sbr.rel (!%p19_p8) target bundleno = 7 (0x7), region = 94 }
  0xaa   :  { %396 = vsyncpa [#allocation3], 1 }
  0xab   :  { %398 = vsyncpa [#allocation3 + $0x1], 1 }
  0xac   :  { %399 = vsyncpa [#allocation6], 1 }
  0xad   :  { %401 = vsyncpa [#allocation6 + $0x1], 1 }
  0xae   :  { %402 = vsyncpa [#allocation4], 1 }
  0xaf   :  { %404 = vsyncpa [#allocation4 + $0x1], 1 }

// kernel: conv_block_forward_nhwc.2
= control target key start
LH: loop header
LB: loop body
LE: loop exit
PB: predicated region body
PF: predicated region fallthrough
CT: control target
= control target key end

     0   :  { %s4218_s0 = inlined_call_operand.hbm [shape: f32[72,1], index: 0, kind: input, shape index: {}]   ;;  %s4219_s1 = inlined_call_operand.hbm [shape: bf16[2,4,90,8], index: 1, kind: input, shape index: {}]   ;;  %s4220_s2 = inlined_call_operand.hbm [shape: bf16[9,8,8], index: 2, kind: input, shape index: {}]   ;;  %s4221_s3 = inlined_call_operand.hbm [shape: bf16[8,8], index: 3, kind: input, shape index: {}]   ;;  %s4222_s4 = inlined_call_operand.hbm [shape: bf16[2,72,8], index: 4, kind: output, shape index: {0}]   ;;  %s4223_s5 = inlined_call_operand.hbm [shape: bf16[2,72,8], index: 5, kind: output, shape index: {1}]   ;;  %s4224_s6 = inlined_call_operand.hbm [shape: f32[2,4,8], index: 6, kind: output, shape index: {2}]  }
   0x1   :  { %4237 = sst [smem:[#allocation25_spill]] %s4220_s2 }
   0x2   :  { %12 = vsyncpa [#allocation4], 0 }
   0x3   :  { %13 = vsyncpa [#allocation7], 0 }
   0x4   :  { %15 = vsyncpa [#allocation7 + $0x1], 0 }
   0x5   :  { %16 = vsyncpa [#allocation10], 0 }
   0x6   :  { %17 = vsyncpa [#allocation5], 0 }
   0x7   :  { %19 = vsyncpa [#allocation5 + $0x1], 0 }
   0x8   :  { %20 = vsyncpa [#allocation13], 0 }
   0x9   :  { %22 = vsyncpa [#allocation13 + $0x1], 0  ;;  %s3437_s21 = smov 0   ;;  %s3439_s22 = smov 0  }
   0xa   :  { %s3441_s23 = smov 0   ;;  %s3443_s24 = smov 0  }
   0xb LB: > { %4238 = sst [smem:[#allocation21_spill]] %s3372_s21  ;;  %s3458_s25 = sadd.s32 4294967295, %s3384_s24   ;;  %s3384_s24 = sphi %s3443_s24, %s4270_s24   ;;  %s3380_s23 = sphi %s3441_s23, %s4274_s23   ;;  %s3376_s22 = sphi %s3439_s22, %s4273_s22   ;;  %s3372_s21 = sphi %s3437_s21, %s4272_s21  }
   0xc   : > { %s4225_s26 = sadd.s32 4294967294, %s3384_s24   ;;  %s3462_s27 = sadd.s32 1, %s3384_s24  }
   0xd   : > { %4239 = sst [smem:[#allocation22_spill]] %s3462_s27  ;;  %s56_s28 = sadd.s32 1, %s3380_s23 }
   0xe   : > { %s53_s29 = ssub.s32 %s3384_s24, %s3462_s27  ;;  %p63_p0 = scmp.ne.s32.totalorder %s3380_s23, %s3376_s22 }
   0xf   : > { %p54_p1 = scmp.eq.s32.totalorder %s53_s29, 0  ;;  %p64_p2 = scmp.eq.s32.totalorder %s3384_s24, 0 }
  0x10   : > { %p69_p3 = scmp.ne.s32.totalorder %s3376_s22, %s3372_s21  ;;  %p4226_p4 = scmp.eq.s32.totalorder %s3458_s25, 0 }
  0x11   : > { %s3474_s30 = scalar_select %p54_p1, %s3380_s23, %s56_s28  }
  0x12   : > { %p3476_p5 = por %p64_p2, %p63_p0  ;;  %p3482_p6 = por %p4226_p4, %p69_p3 }
  0x13   : > { %4240 = sst [smem:[#allocation23_spill]] %s3474_s30  ;;  %p135_p7 = scmp.eq.s32.totalorder %s3458_s25, 1 }
  0x14   : > { %s4241_s7 = scalar_select %p3476_p5, 1, 0 }
  0x15   : > { %s4242_s8 = scalar_select %p3482_p6, 1, 0 }
  0x16   : > { %p141_p8 = scmp.eq.s32.totalorder %s4225_s26, 1  ;;  %p2489_p9 = scmp.ge.s32.totalorder %s3384_s24, 1 }
  0x17   : > { %p200_p10 = scmp.lt.s32.totalorder %s3384_s24, 3  ;;  %p3491_p11 = por %p135_p7, %p63_p0 }
  0x18   : > { %p3495_p12 = por %p141_p8, %p69_p3  ;;  %s3386_s12 = smov [#allocation8]  }
  0x19   : > { %s4243_s9 = scalar_select %p3491_p11, 1, 0 }
  0x1a   : > { %s4244_s10 = scalar_select %p3495_p12, 1, 0 }
  0x1b   : > { %p3499_p13 = pnand %p2489_p9, %p200_p10  ;;  %s225_s13 = sshll.u32 %s3386_s12, 4  ;;  %s226_s13 = int_to_ptr.vmem [resolvable:$true] %s225_s13 }
  0x1c   : > { %4245 = sst [smem:[#allocation24_spill]] %s4244_s10  ;;  %s3387_s15 = smov [#allocation3]  }
  0x1d   : > { %s4246_s11 = scalar_select %p3499_p13, 1, 0 }
  0x1e   : > { %p3004_p1 = pneg %p3499_p13  ;;  %s212_s16 = sshll.u32 %s3387_s15, 4  ;;  %s213_s16 = int_to_ptr.vmem [resolvable:$true] %s212_s16 }
  0x1f   : > { %s4248_s2 = sld [smem:[#allocation25_spill]] }
  0x20   : > { %p3507_p2 = pnand %p3004_p1, %p4226_p4 }
  0x22   : > { %p3521_p8 = pneg %p3507_p2 }
  0x25   : > { %s3132_s19 = scalar_lea.hbm %s4248_s2, 576 }
  0x26   : > { %p3133_p7 = scmp.ne.s32.totalorder %s4248_s2, %s3132_s19  ;;  %p3139_p1 = scmp.lt.u32.totalorder %s3132_s19, %s4248_s2 }
  0x28   : > { %p3135_p9 = pnand %p3521_p8, %p3133_p7 }
  0x2a   : > { %p3136_p10 = pneg %p3135_p9 }
  0x2c   : > { %p3141_p0 = pnand %p3139_p1, %p3136_p10 }
  0x2e   : > { %3144 = shalt.err (!%p3141_p0)
}
  0x2f   : > { %s3145_s15 = scalar_lea.vmem %s226_s13, 576  ;;  %p3153_p11 = scmp.lt.s32.totalorder %s226_s13, %s226_s13 }
  0x30   : > { %p3146_p4 = scmp.ne.s32.totalorder %s226_s13, %s3145_s15  ;;  %p3154_p6 = scmp.lt.s32.totalorder %s3145_s15, %s3145_s15 }
  0x32   : > { %p3148_p3 = pnand %p3146_p4, %p3521_p8  ;;  %p3155_p13 = por %p3154_p6, %p3153_p11 }
  0x34   : > { %p3149_p12 = pneg %p3148_p3 }
  0x36   : > { %p3156_p5 = pnand %p3155_p13, %p3149_p12 }
  0x38   : > { %3159 = shalt.err (!%p3156_p5)
}
  0x39   : > { %s4233_s17 = smov 64   ;;  %s4234_s26 = smov 4  }
  0x3a   : > { %3010 = dma.hbm_to_vmem [thread:$0]  (!%p3507_p2), %s4248_s2, 576, %s226_s13, [#allocation7], %s4233_s17, %s4233_s17, %s4234_s26  }
  0x3b   : > { %p4250_p4 = scmp.ne.s32.totalorder %s4241_s7, 0  ;;  %p4251_p0 = scmp.lt.s32.totalorder %s3384_s24, 2 }
  0x3c   : > { %s3160_s15 = scalar_lea.hbm %s4218_s0, 1152 }
  0x3d   : > { %p3544_p3 = pnand %p4251_p0, %p4250_p4  ;;  %p3161_p5 = scmp.ne.s32.totalorder %s4218_s0, %s3160_s15 }
  0x3e   : > { %p3167_p12 = scmp.lt.u32.totalorder %s3160_s15, %s4218_s0 }
  0x3f   : > { %s4252_s20 = scalar_select %p3544_p3, 1, 0 }
  0x40   : > { %p3163_p6 = pnand %p3161_p5, %p3521_p8 }
  0x42   : > { %p3164_p11 = pneg %p3163_p6 }
  0x44   : > { %p3169_p13 = pnand %p3167_p12, %p3164_p11 }
  0x46   : > { %3172 = shalt.err (!%p3169_p13)
}
  0x47   : > { %s3173_s7 = scalar_lea.vmem %s213_s16, 1152  ;;  %p3181_p1 = scmp.lt.s32.totalorder %s213_s16, %s213_s16 }
  0x48   : > { %p3174_p7 = scmp.ne.s32.totalorder %s213_s16, %s3173_s7  ;;  %p3182_p4 = scmp.lt.s32.totalorder %s3173_s7, %s3173_s7 }
  0x4a   : > { %p3176_p9 = pnand %p3174_p7, %p3521_p8  ;;  %p3183_p0 = por %p3182_p4, %p3181_p1 }
  0x4c   : > { %p3177_p10 = pneg %p3176_p9 }
  0x4e   : > { %p3184_p3 = pnand %p3183_p0, %p3177_p10 }
  0x50   : > { %3187 = shalt.err (!%p3184_p3)
}
  0x51   : > { %s3390_s27 = smov 128   ;;  %s3391_s30 = smov 8  }
  0x52   : > { %3007 = dma.hbm_to_vmem [thread:$0]  (!%p3507_p2), %s4218_s0, 1152, %s213_s16, [#allocation4], %s3390_s27, %s3390_s27, %s3391_s30  }
  0x53   : > { %s3392_s12 = smov [#allocation9]   ;;  %s250_s18 = sand.u32 1, %s3384_s24  }
  0x54   : > { %s239_s15 = sshll.u32 %s3392_s12, 4  ;;  %s3188_s7 = scalar_lea.hbm %s4221_s3, 64  ;;  %s240_s15 = int_to_ptr.vmem [resolvable:$true] %s239_s15 }
  0x55   : > { %p3189_p3 = scmp.ne.s32.totalorder %s4221_s3, %s3188_s7  ;;  %p3195_p11 = scmp.lt.u32.totalorder %s3188_s7, %s4221_s3 }
  0x57   : > { %p3191_p5 = pnand %p3189_p3, %p3521_p8 }
  0x59   : > { %p3192_p6 = pneg %p3191_p5 }
  0x5b   : > { %p3197_p12 = pnand %p3195_p11, %p3192_p6 }
  0x5d   : > { %3200 = shalt.err (!%p3197_p12)
}
  0x5e   : > { %s3201_s16 = scalar_lea.vmem %s240_s15, 64  ;;  %p3209_p10 = scmp.lt.s32.totalorder %s240_s15, %s240_s15 }
  0x5f   : > { %p3202_p13 = scmp.ne.s32.totalorder %s240_s15, %s3201_s16  ;;  %p3210_p1 = scmp.lt.s32.totalorder %s3201_s16, %s3201_s16 }
  0x61   : > { %p3204_p7 = pnand %p3202_p13, %p3521_p8  ;;  %p3211_p4 = por %p3210_p1, %p3209_p10 }
  0x63   : > { %p3205_p9 = pneg %p3204_p7 }
  0x65   : > { %p3212_p0 = pnand %p3211_p4, %p3205_p9 }
  0x67   : > { %3215 = shalt.err (!%p3212_p0)
}
  0x68   : > { %3013 = dma.hbm_to_vmem [thread:$0]  (!%p3507_p2), %s4221_s3, 64, %s240_s15, [#allocation10]  }
  0x69   : > { %s252_s21 = sand.u32 1, %s3380_s23   ;;  %s2979_s10 = smul.u32 3072, %s3384_s24 }
  0x6a   : > { %s2978_s29 = smul.u32 192, %s252_s21  ;;  %s3594_s28 = scalar_lea.sflag [#allocation7], %s250_s18 }
  0x6b   : > { %s3590_s30 = scalar_lea.hbm %s4219_s1, %s2979_s10  ;;  %p4253_p8 = scmp.ne.s32.totalorder %s4252_s20, 0 }
  0x6c   : > { %s254_s14 = scalar_lea.vmem [#allocation6], %s2978_s29  ;;  %s3216_s12 = scalar_lea.hbm %s3590_s30, 3072 }
  0x6d   : > { %s261_s19 = sshll.u32 %s254_s14, 4  ;;  %p3217_p2 = scmp.ne.s32.totalorder %s3590_s30, %s3216_s12  ;;  %s3592_s19 = int_to_ptr.vmem [resolvable:$true] %s261_s19 }
  0x6e   : > { %p3218_p3 = pneg %p4253_p8  ;;  %s3221_s7 = scalar_lea.hbm %s4219_s1, 6144 }
  0x6f   : > { %p3222_p11 = scmp.lt.u32.totalorder %s3590_s30, %s4219_s1  ;;  %p3223_p12 = scmp.lt.u32.totalorder %s3221_s7, %s3216_s12 }
  0x70   : > { %p3219_p5 = pnand %p3218_p3, %p3217_p2  ;;  %p3225_p7 = scmp.lt.u32.totalorder %s3216_s12, %s3590_s30 }
  0x71   : > { %p3224_p13 = por %p3223_p12, %p3222_p11 }
  0x72   : > { %p3220_p6 = pneg %p3219_p5 }
  0x73   : > { %p3226_p9 = por %p3225_p7, %p3224_p13 }
  0x75   : > { %p3227_p10 = pnand %p3226_p9, %p3220_p6 }
  0x77   : > { %3230 = shalt.err (!%p3227_p10)
}
  0x78   : > { %s3231_s18 = scalar_lea.vmem %s3592_s19, 3072  ;;  %s3393_s17 = smov [#allocation6]  }
  0x79   : > { %p3232_p1 = scmp.ne.s32.totalorder %s3592_s19, %s3231_s18  ;;  %s3236_s21 = sshll.u32 %s3393_s17, 4  ;;  %s3237_s21 = int_to_ptr.vmem [resolvable:$false] %s3236_s21 }
  0x7a   : > { %s3238_s10 = scalar_lea.vmem %s3237_s21, 6144  ;;  %p3239_p2 = scmp.lt.s32.totalorder %s3592_s19, %s3237_s21 }
  0x7b   : > { %p3234_p4 = pnand %p3232_p1, %p3218_p3  ;;  %p3240_p5 = scmp.lt.s32.totalorder %s3238_s10, %s3231_s18 }
  0x7d   : > { %p3235_p0 = pneg %p3234_p4  ;;  %p3241_p11 = por %p3240_p5, %p3239_p2 }
  0x7f   : > { %p3242_p12 = pnand %p3241_p11, %p3235_p0 }
  0x81   : > { %3245 = shalt.err (!%p3242_p12)
}
  0x82   : > { %s4254_s29 = smov 4   ;;  %s4255_s26 = smov 64  }
  0x83   : > { %3017 = dma.hbm_to_vmem [thread:$0]  (!%p4253_p8), %s3590_s30, 3072, %s3592_s19, %s3594_s28, %s4255_s26, %s4255_s26, %s4254_s29  }
  0x84   : > { %p4256_p3 = scmp.ne.s32.totalorder %s4246_s11, 0 }
  0x85   : > { %p4257_p6 = scmp.eq.s32.totalorder (!%p4256_p3), %s3458_s25, 0 }
  0x86   : > { %273 = sbr.rel (%p4256_p3) target bundleno = 634 (0x27a), region = 36 }
  0x8d   : > { %3347 = dma.done.wait (%p4257_p6), [#allocation4], 1152   ;;  %p4258_p13 = pmov %p4257_p6 }
  0x8e   : > { %s279_s20 = sand.u32 1, %s3458_s25   ;;  %s3633_s27 = sand.u32 1, %s3376_s22  }
  0x8f   : > { %3349 = vsyncadd (%p4258_p13), [#allocation4], 4294966144  ;;  %s2980_s14 = smul.u32 192, %s3633_s27  ;;  %s280_s30 = scalar_lea.sflag [#allocation7], %s279_s20 }
  0x90   : > { %p4259_p8 = scmp.ne.s32.totalorder %s4242_s8, 0 }
  0x91   : > { %s3638_s19 = scalar_lea.vmem [#allocation6], %s2980_s14 }
  0x92   : > { %3351 = dma.done.wait (%p4259_p8), %s280_s30, 3072  }
  0x93   : > { %3353 = vsyncadd (%p4259_p8), %s280_s30, 4294964224  ;;  %p4260_p7 = pmov %p4257_p6 }
  0x94   : > { %p4261_p9 = pmov %p4257_p6 }
  0x95   : > { %3355 = dma.done.wait (%p4260_p7), [#allocation7], 576  }
  0x96   : > { %3357 = vsyncadd (%p4261_p9), [#allocation7], 4294966720  ;;  %p4262_p10 = pmov %p4257_p6 }
  0x97   : > { %p4263_p1 = pmov %p4257_p6 }
  0x98   : > { %3359 = dma.done.wait (%p4262_p10), [#allocation10], 64  }
  0x99   : > { %3361 = vsyncadd (%p4263_p1), [#allocation10], 4294967232  ;;  %v3394_v0 = vmov 0.0   ;;  %vm3395_vm0 = vmmov 0   ;;  %vm380_vm1 = vcmask 1043456   ;;  %vm364_vm2 = vcmask 64512  }
  0x9a   : > { %2758 = vmatprep.subr.bf16.mxu0 %v3394_v0  ;;  %2780 = vmatprep.subr.bf16.mxu1 %v3394_v0  ;;  %v340_v1 = vld [vmem:[#allocation8] sm:$0xf]  ;;  %v476_v2 = vld [vmem:[#allocation8 + $0x4] sm:$0xf]  ;;  %v3083_v6 = vld [vmem:[%s3638_s19 + $0x30] sm:$0xff]   ;;  %vm1731_vm4 = vcmask 1046528  }
  0x9b   : > { %2760 = vmatprep.mubr.msk.bf16.mxu0 %vm3395_vm0, %v3394_v0  ;;  %2782 = vmatprep.mubr.msk.bf16.mxu1 %vm3395_vm0, %v3394_v0  ;;  %v382_v3 = vsel %vm380_vm1, %v340_v1, 0  ;;  %v516_v4 = vsel %vm380_vm1, %v476_v2, 0  ;;  %v3082_v5 = vld [vmem:[%s3638_s19] sm:$0xff]   ;;  %v628_v7 = vld [vmem:[#allocation8 + $0x8] sm:$0xf]  ;;  %v3085_v12 = vld [vmem:[%s3638_s19 + $0x38] sm:$0xff]  }
  0x9c   : > { %2759 = vmatpush3.bf16.msra.mxu0 %v382_v3  ;;  %2781 = vmatpush3.bf16.msra.mxu1 %v516_v4  ;;  %v710_v8 = vsel %vm380_vm1, %v628_v7, 0  ;;  %v822_v9 = vld [vmem:[#allocation8 + $0xc] sm:$0xf]  ;;  %v3086_v13 = vld [vmem:[%s3638_s19 + $0x10] sm:$0xff]   ;;  %v3087_v14 = vld [vmem:[%s3638_s19 + $0x40] sm:$0xff]   ;;  %s2981_s8 = smul.u32 36, %s3633_s27 }
  0x9d   : > { %2802 = vmatprep.subr.bf16.mxu0 %v3394_v0  ;;  %2824 = vmatprep.subr.bf16.mxu1 %v3394_v0  ;;  %v862_v10 = vsel %vm380_vm1, %v822_v9, 0  ;;  %v3084_v11 = vld [vmem:[%s3638_s19 + $0x8] sm:$0xff]   ;;  %v3088_v15 = vld [vmem:[%s3638_s19 + $0x18] sm:$0xff]   ;;  %v3092_v17 = vld [vmem:[%s3638_s19] sm:$0xff]   ;;  %vm654_vm3 = vsmask.f32 7424 }
  0x9e   : > { %v3089_v16 = vld [vmem:[%s3638_s19 + $0x48] sm:$0xff]   ;;  %v658_v19 = vshll.u32 %v3092_v17, 16  ;;  %v3090_v20 = vld [vmem:[%s3638_s19 + $0x20] ss:$0 sps:$4 sm:$0xff]   ;;  %v3091_v21 = vld [vmem:[%s3638_s19 + $0x50] ss:$0 sps:$4 sm:$0xff]  }
  0x9f   : > { %2761 = vmatmul.mubr.msk.bf16.vlgmr.msra.gmra.mrb[0].mxu0 %vm364_vm2, %v3082_v5  ;;  %2783 = vmatmul.mubr.msk.bf16.vlgmr.msra.gmra.mrb[0].mxu1 %vm364_vm2, %v3083_v6  ;;  %v3093_v18 = vld [vmem:[%s3638_s19 + $0x8] sm:$0xff]   ;;  %v656_v22 = vshrl.u32 %v3092_v17, 16  ;;  %v3095_v27 = vld [vmem:[%s3638_s19 + $0x10] sm:$0xff]   ;;  %v3094_v29 = vld [vmem:[%s3638_s19 + $0x60] sm:$0xff]   ;;  %vm1904_vm5 = vcmask 60416   ;;  %s3974_s11 = scalar_lea.vmem [#allocation12], %s2981_s8 }
  0xa0   : > { %2803 = vmatpush3.bf16.msra.mxu0 %v710_v8  ;;  %2764 = vmatprep.mubr.msk.bf16.mxu0 %vm3395_vm0, %v3394_v0  ;;  %v660_v23 = vrot.slane %v658_v19, 1  ;;  %v663_v24 = vshll.u32 %v3093_v18, 16  ;;  %v974_v28 = vld [vmem:[#allocation8 + $0x10] sm:$0xf]  ;;  %v1126_v30 = vld [vmem:[#allocation8 + $0x14] sm:$0xf] }
  0xa1   : > { %2786 = vmatprep.mubr.msk.bf16.mxu1 %vm3395_vm0, %v3394_v0  ;;  %2825 = vmatpush3.bf16.msra.mxu1 %v862_v10  ;;  %v667_v32 = vshrl.u32 %v3093_v18, 16  ;;  %v671_v33 = vshll.u32 %v3095_v27, 16  ;;  %v1014_v34 = vsel %vm380_vm1, %v974_v28, 0  ;;  %v1207_v35 = vsel %vm380_vm1, %v1126_v30, 0  ;;  %v3097_v36 = vld [vmem:[%s3638_s19 + $0x18] sm:$0xff]   ;;  %v3096_v39 = vld [vmem:[%s3638_s19 + $0x68] sm:$0xff]  }
  0xa2   : > { %2846 = vmatprep.subr.bf16.mxu0 %v3394_v0  ;;  %2868 = vmatprep.subr.bf16.mxu1 %v3394_v0  ;;  %v661_v25 = vor.u32 %v660_v23, %v656_v22  ;;  %v665_v26 = vrot.slane %v663_v24, 1  ;;  %v679_v40 = vshll.u32 %v3097_v36, 16  ;;  %v675_v42 = vshrl.u32 %v3095_v27, 16  ;;  %v3099_v45 = vld [vmem:[%s3638_s19 + $0x20] sm:$0x1f]   ;;  %v3098_v46 = vld [vmem:[%s3638_s19 + $0x70] sm:$0xff]  }
  0xa3   : > { %v673_v38 = vrot.slane %v671_v33, 1  ;;  %v683_v48 = vshrl.u32 %v3097_v36, 16  ;;  %v687_v49 = vshll.u32 %v3099_v45, 16  ;;  %v3100_v52 = vld [vmem:[%s3638_s19 + $0x78] sm:$0xff]   ;;  %v3103_v54 = vld [vmem:[%s3638_s19 + $0x60] sm:$0xff]   ;;  %v691_v55 = vshrl.u32 %v3099_v45, 16 }
  0xa4   : > { %v666_v31 = vsel %vm654_vm3, %v661_v25, %v665_v26  ;;  %v669_v37 = vor.u32 %v667_v32, %v665_v26  ;;  %v681_v43 = vrot.slane %v679_v40, 1  ;;  %v3104_v56 = vld [vmem:[%s3638_s19 + $0x68] sm:$0xff]   ;;  %v1155_v57 = vshll.u32 %v3103_v54, 16  ;;  %v3101_v59 = vld [vmem:[%s3638_s19 + $0x80] ss:$0 sps:$4 sm:$0xff]   ;;  %v3106_v2 = vld [vmem:[%s3638_s19 + $0x70] sm:$0xff]  }
  0xa5   : > { %v677_v44 = vor.u32 %v675_v42, %v673_v38  ;;  %v689_v51 = vrot.slane %v687_v49, 1  ;;  %v1153_v60 = vshrl.u32 %v3103_v54, 16  ;;  %v1160_v62 = vshll.u32 %v3104_v56, 16  ;;  %v1319_v3 = vld [vmem:[#allocation8 + $0x18] sm:$0xf]  ;;  %v3102_v4 = vld [vmem:[%s3638_s19 + $0x90] sm:$0xff]  }
  0xa6   : > { %v674_v41 = vsel %vm654_vm3, %v669_v37, %v673_v38  ;;  %v685_v50 = vor.u32 %v683_v48, %v681_v43  ;;  %v1157_v61 = vrot.slane %v1155_v57, 1  ;;  %v1512_v5 = vld [vmem:[#allocation8 + $0x1c] sm:$0xf]  ;;  %v1164_v7 = vshrl.u32 %v3104_v56, 16  ;;  %v3109_v27 = vld [vmem:[%s3638_s19 + $0xa8] sm:$0xff]   ;;  %v3114_v30 = vld [vmem:[%s3638_s19 + $0x34] sm:$0xff]  }
  0xa7   : > { %2765 = vmatmul.mubr.msk.bf16.gmra.mrb[4].mxu0 %vm364_vm2, %v3084_v11  ;;  %2787 = vmatmul.mubr.msk.bf16.gmra.mrb[4].mxu1 %vm364_vm2, %v3085_v12  ;;  %v682_v47 = vsel %vm654_vm3, %v677_v44, %v681_v43  ;;  %v693_v58 = vor.u32 %v691_v55, %v689_v51  ;;  %v1162_v1 = vrot.slane %v1160_v62, 1  ;;  %v1168_v8 = vshll.u32 %v3106_v2, 16  ;;  %v3113_v32 = vld [vmem:[%s3638_s19 + $0xc] sm:$0xff]   ;;  %v3116_v44 = vld [vmem:[%s3638_s19 + $0x14] sm:$0xff]   ;;  %v3117_v49 = vld [vmem:[%s3638_s19 + $0x44] sm:$0xff]   ;;  %s3998_s28 = scalar_lea.vmem [#allocation11], %s2981_s8 }
  0xa8   : > { %2768 = vmatprep.mubr.msk.bf16.mxu0 %vm3395_vm0, %v3394_v0  ;;  %2790 = vmatprep.mubr.msk.bf16.mxu1 %vm3395_vm0, %v3394_v0  ;;  %v690_v53 = vsel %vm654_vm3, %v685_v50, %v689_v51  ;;  %v1158_v63 = vor.u32 %v1157_v61, %v1153_v60  ;;  %v1400_v9 = vsel %vm380_vm1, %v1319_v3, 0  ;;  %v1593_v10 = vsel %vm380_vm1, %v1512_v5, 0  ;;  %v3111_v36 = vld [vmem:[%s3638_s19 + $0xb0] ss:$0 sps:$4 sm:$0xff]   ;;  %v1705_v50 = vld [vmem:[#allocation8 + $0x20] sm:$0xf] }
  0xa9   : > { %v1166_v11 = vor.u32 %v1164_v7, %v1162_v1  ;;  %v1170_v12 = vrot.slane %v1168_v8, 1  ;;  %v1357_v51 = vshrl.u32 %v3113_v32, 16  ;;  %v1554_v57 = vshll.u32 %v3117_v49, 16  ;;  %v3118_v3 = vld [vmem:[%s3638_s19 + $0x1c] sm:$0xff]   ;;  %v1916_v5 = vld [vmem:[#allocation3 + $0x10] sm:$0xff]  ;;  %s2982_s12 = smul.u32 576, %s3458_s25 }
  0xaa   : > { %v1163_v6 = vsel %vm654_vm3, %v1158_v63, %v1162_v1  ;;  %v3396_v60 = vmov 0   ;;  %v1914_v63 = vld [vmem:[#allocation3] sm:$0xff]  ;;  %v1365_v7 = vshrl.u32 %v3116_v44, 16  ;;  %v1915_v8 = vld [vmem:[#allocation3 + $0x8] sm:$0xff]  ;;  %s2310_s15 = sshll.u32 %s3974_s11, 4  ;;  %s4087_s2 = scalar_lea.sflag [#allocation13], %s279_s20  ;;  %s4077_s15 = int_to_ptr.vmem [resolvable:$true] %s2310_s15 }
  0xab   : > { %3080 = vset.pattern.permute.xlu0 %v3396_v60  ;;  %3081 = vset.pattern.permute.xlu1 %v3396_v60  ;;  %s4075_s16 = scalar_lea.hbm %s4223_s5, %s2982_s12  ;;  %s3246_s18 = scalar_lea.vmem %s4077_s15, 576 }
  0xac   : > { %1925 = vperm.xlu0 %3080, %v1914_v63   ;;  %1935 = vperm.xlu1 %3081, %v1916_v5   ;;  %p3247_p4 = scmp.ne.s32.totalorder %s4077_s15, %s3246_s18  ;;  %p4264_p0 = scmp.ne.s32.totalorder %s4243_s9, 0 }
  0xad   : > { %s3397_s17 = smov [#allocation12]  }
  0xae   : > { %p3248_p2 = pnand %p3247_p4, %p4264_p0  ;;  %s3250_s21 = sshll.u32 %s3397_s17, 4  ;;  %s3251_s21 = int_to_ptr.vmem [resolvable:$false] %s3250_s21 }
  0xaf   : > { %2769 = vmatmul.mubr.msk.bf16.gmra.mrb[8].mxu0 %vm364_vm2, %v3086_v13  ;;  %2791 = vmatmul.mubr.msk.bf16.gmra.mrb[8].mxu1 %vm364_vm2, %v3087_v14  ;;  %v3108_v13 = vld [vmem:[%s3638_s19 + $0x78] sm:$0xff]   ;;  %s3252_s10 = scalar_lea.vmem %s3251_s21, 1152  ;;  %p3253_p11 = scmp.lt.s32.totalorder %s4077_s15, %s3251_s21 }
  0xb0   : > { %2772 = vmatprep.mubr.msk.bf16.mxu0 %vm3395_vm0, %v3394_v0  ;;  %2794 = vmatprep.mubr.msk.bf16.mxu1 %vm3395_vm0, %v3394_v0  ;;  %v3105_v14 = vld [vmem:[%s3638_s19 + $0x98] sm:$0xff]   ;;  %v1176_v17 = vshll.u32 %v3108_v13, 16  ;;  %v1180_v23 = vshrl.u32 %v3108_v13, 16  ;;  %v1917_v13 = vld [vmem:[#allocation3 + $0x18] sm:$0xff]  ;;  %p3249_p5 = pneg %p3248_p2  ;;  %p3254_p12 = scmp.lt.s32.totalorder %s3252_s10, %s3246_s18 }
  0xb1   : > { %1930 = vperm.xlu0 %3080, %v1915_v8   ;;  %1940 = vperm.xlu1 %3081, %v1917_v13  }
  0xb2   : > { %v1178_v19 = vrot.slane %v1176_v17, 1  ;;  %p3255_p3 = por %p3254_p12, %p3253_p11 }
  0xb4   : > { %v1182_v25 = vor.u32 %v1180_v23, %v1178_v19  ;;  %p3256_p6 = pnand %p3255_p3, %p3249_p5 }
  0xb7   : > { %2773 = vmatmul.mubr.msk.bf16.gmra.mrb[12].mxu0 %vm364_vm2, %v3088_v15  ;;  %2795 = vmatmul.mubr.msk.bf16.gmra.mrb[12].mxu1 %vm364_vm2, %v3089_v16  ;;  %v1171_v15 = vsel %vm654_vm3, %v1166_v11, %v1170_v12  ;;  %v1172_v16 = vshrl.u32 %v3106_v2, 16  ;;  %v1556_v2 = vrot.slane %v1554_v57, 1  ;;  %v1558_v11 = vshrl.u32 %v3117_v49, 16  ;;  %v3126_v49 = vld [vmem:[%s3638_s19 + $0x98] sm:$0xff]   ;;  %v3130_v57 = vld [vmem:[%s3638_s19 + $0xa8] sm:$0xff]  }
  0xb8   : > { %2776 = vmatprep.mubr.msk.bf16.mxu0 %vm3395_vm0, %v3394_v0  ;;  %2798 = vmatprep.mubr.msk.bf16.mxu1 %vm3395_vm0, %v3394_v0 }
  0xb9   : > { %v1174_v18 = vor.u32 %v1172_v16, %v1170_v12  ;;  %v1560_v17 = vor.u32 %v1558_v11, %v1556_v2 }
  0xbb   : > { %v1179_v22 = vsel %vm654_vm3, %v1174_v18, %v1178_v19  ;;  %v3121_v19 = vld [vmem:[%s3638_s19 + $0x54] sm:$0x1f]  }
  0xbf   : > { %2777 = vmatmul.mubr.msk.bf16.gmra.mrb[16].mxu0 %vm364_vm2, %v3090_v20  ;;  %2799 = vmatmul.mubr.msk.bf16.gmra.mrb[16].mxu1 %vm364_vm2, %v3091_v21  ;;  %v3110_v20 = vld [vmem:[%s3638_s19 + $0x80] sm:$0x1f]  }
  0xc0   : > { %2804 = vmatprep.mubr.msk.bf16.mxu0 %vm3395_vm0, %v3394_v0  ;;  %2826 = vmatprep.mubr.msk.bf16.mxu1 %vm3395_vm0, %v3394_v0  ;;  %v3107_v21 = vld [vmem:[%s3638_s19 + $0xa0] sm:$0xff]   ;;  %v1184_v24 = vshll.u32 %v3110_v20, 16 }
  0xc2   : > { %v1186_v26 = vrot.slane %v1184_v24, 1 }
  0xc4   : > { %v1187_v28 = vsel %vm654_vm3, %v1182_v25, %v1186_v26 }
  0xc7   : > { %2805 = vmatmul.mubr.msk.bf16.vlgmr.msra.gmra.mrb[20].mxu0 %vm364_vm2, %v666_v31  ;;  %2827 = vmatmul.mubr.msk.bf16.vlgmr.msra.gmra.mrb[20].mxu1 %vm364_vm2, %v3094_v29  ;;  %v3112_v29 = vld [vmem:[%s3638_s19 + $0x4] sm:$0xff]   ;;  %v1188_v31 = vshrl.u32 %v3110_v20, 16  ;;  %v1918_v20 = vld [vmem:[#allocation3 + $0x20] sm:$0xff] }
  0xc8   : > { %2847 = vmatpush3.bf16.msra.mxu0 %v1014_v34  ;;  %2808 = vmatprep.mubr.msk.bf16.mxu0 %vm3395_vm0, %v3394_v0  ;;  %v1348_v33 = vshll.u32 %v3112_v29, 16  ;;  %v3115_v34 = vld [vmem:[%s3638_s19 + $0x3c] sm:$0xff]   ;;  %v1346_v38 = vshrl.u32 %v3112_v29, 16 }
  0xc9   : > { %2830 = vmatprep.mubr.msk.bf16.mxu1 %vm3395_vm0, %v3394_v0  ;;  %2869 = vmatpush3.bf16.msra.mxu1 %v1207_v35  ;;  %v1541_v35 = vshll.u32 %v3114_v30, 16  ;;  %v1190_v37 = vor.u32 %v1188_v31, %v1186_v26  ;;  %v1546_v43 = vshll.u32 %v3115_v34, 16  ;;  %v1550_v56 = vshrl.u32 %v3115_v34, 16 }
  0xca   : > { %2890 = vmatprep.subr.bf16.mxu0 %v3394_v0  ;;  %2912 = vmatprep.subr.bf16.mxu1 %v3394_v0  ;;  %v1350_v40 = vrot.slane %v1348_v33, 1  ;;  %v1570_v26 = vshll.u32 %v3121_v19, 16  ;;  %v1922_v33 = vld [vmem:[#allocation3 + $0x40] sm:$0xff] }
  0xcb   : > { %v1543_v42 = vrot.slane %v1541_v35, 1  ;;  %v1548_v48 = vrot.slane %v1546_v43, 1  ;;  %1945 = vperm.xlu0 %3080, %v1918_v20  }
  0xcc   : > { %v1351_v45 = vor.u32 %v1350_v40, %v1346_v38  ;;  %v1574_v38 = vshrl.u32 %v3121_v19, 16 }
  0xcd   : > { %v1552_v1 = vor.u32 %v1550_v56, %v1548_v48 }
  0xcf   : > { %2809 = vmatmul.mubr.msk.bf16.gmra.mrb[24].mxu0 %vm364_vm2, %v674_v41  ;;  %2831 = vmatmul.mubr.msk.bf16.gmra.mrb[24].mxu1 %vm364_vm2, %v3096_v39  ;;  %v1353_v39 = vshll.u32 %v3113_v32, 16  ;;  %v1539_v41 = vshrl.u32 %v3114_v30, 16  ;;  %v1572_v32 = vrot.slane %v1570_v26, 1 }
  0xd0   : > { %2812 = vmatprep.mubr.msk.bf16.mxu0 %vm3395_vm0, %v3394_v0  ;;  %2834 = vmatprep.mubr.msk.bf16.mxu1 %vm3395_vm0, %v3394_v0 }
  0xd1   : > { %v1576_v40 = vor.u32 %v1574_v38, %v1572_v32 }
  0xd7   : > { %2813 = vmatmul.mubr.msk.bf16.gmra.mrb[28].mxu0 %vm364_vm2, %v682_v47  ;;  %2835 = vmatmul.mubr.msk.bf16.gmra.mrb[28].mxu1 %vm364_vm2, %v3098_v46  ;;  %v1355_v46 = vrot.slane %v1353_v39, 1  ;;  %v1544_v47 = vor.u32 %v1543_v42, %v1539_v41  ;;  %v3122_v41 = vld [vmem:[%s3638_s19 + $0x4] sm:$0xfe]   ;;  %v3123_v42 = vld [vmem:[%s3638_s19 + $0xc] sm:$0xff]  }
  0xd8   : > { %2816 = vmatprep.mubr.msk.bf16.mxu0 %vm3395_vm0, %v3394_v0  ;;  %2838 = vmatprep.mubr.msk.bf16.mxu1 %vm3395_vm0, %v3394_v0  ;;  %v1732_v43 = vrot.slane %v3122_v41, 1 }
  0xd9   : > { %v1356_v54 = vsel %vm654_vm3, %v1351_v45, %v1355_v46  ;;  %v1549_v55 = vsel %vm654_vm3, %v1544_v47, %v1548_v48  ;;  %v1359_v61 = vor.u32 %v1357_v51, %v1355_v46  ;;  %v3124_v45 = vld [vmem:[%s3638_s19 + $0x90] sm:$0xff]   ;;  %v3127_v51 = vld [vmem:[%s3638_s19 + $0x1c] sm:$0xff]  }
  0xda   : > { %v3125_v47 = vld [vmem:[%s3638_s19 + $0x14] sm:$0xff]  }
  0xdb   : > { %v1735_v48 = vrot.slane %v3125_v47, 1 }
  0xdf   : > { %2817 = vmatmul.mubr.msk.bf16.gmra.mrb[32].mxu0 %vm364_vm2, %v690_v53  ;;  %2839 = vmatmul.mubr.msk.bf16.gmra.mrb[32].mxu1 %vm364_vm2, %v3100_v52  ;;  %v1361_v52 = vshll.u32 %v3116_v44, 16  ;;  %v2044_v53 = vld [vmem:[#allocation9] sm:$0xf]  ;;  %v1733_v44 = vrot.slane %v3123_v42, 1 }
  0xe0   : > { %2820 = vmatprep.mubr.msk.bf16.mxu0 %vm3395_vm0, %v3394_v0  ;;  %2842 = vmatprep.mubr.msk.bf16.mxu1 %vm3395_vm0, %v3394_v0 }
  0xe1   : > { %v1363_v62 = vrot.slane %v1361_v52, 1  ;;  %v1734_v46 = vsel %vm1731_vm4, %v1732_v43, %v1733_v44  ;;  %v1737_v52 = vrot.slane %v3127_v51, 1 }
  0xe7   : > { %2821 = vmatmul.mubr.msk.bf16.gmra.mrb[36].mxu0 %vm364_vm2, %v693_v58  ;;  %2843 = vmatmul.mubr.msk.bf16.gmra.mrb[36].mxu1 %vm364_vm2, %v3101_v59  ;;  %v1757_v58 = vsel %vm380_vm1, %v1705_v50, 0  ;;  %v2084_v59 = vsel %vm380_vm1, %v2044_v53, 0  ;;  %v1736_v50 = vsel %vm1731_vm4, %v1733_v44, %v1735_v48  ;;  %v3128_v53 = vld [vmem:[%s3638_s19 + $0xa0] sm:$0xff]  }
  0xe8   : > { %2848 = vmatprep.mubr.msk.bf16.mxu0 %vm3395_vm0, %v3394_v0  ;;  %2870 = vmatprep.mubr.msk.bf16.mxu1 %vm3395_vm0, %v3394_v0 }
  0xef   : > { %2849 = vmatmul.mubr.msk.bf16.vlgmr.msra.gmra.mrb[40].mxu0 %vm364_vm2, %v3102_v4  ;;  %2871 = vmatmul.mubr.msk.bf16.vlgmr.msra.gmra.mrb[40].mxu1 %vm364_vm2, %v1163_v6  ;;  %v3119_v4 = vld [vmem:[%s3638_s19 + $0x4c] sm:$0xff]   ;;  %v1364_v6 = vsel %vm654_vm3, %v1359_v61, %v1363_v62 }
  0xf0   : > { %2891 = vmatpush3.bf16.msra.mxu0 %v1400_v9  ;;  %2852 = vmatprep.mubr.msk.bf16.mxu0 %vm3395_vm0, %v3394_v0  ;;  %v1557_v9 = vsel %vm654_vm3, %v1552_v1, %v1556_v2  ;;  %v1562_v12 = vshll.u32 %v3119_v4, 16  ;;  %v1566_v25 = vshrl.u32 %v3119_v4, 16 }
  0xf1   : > { %2874 = vmatprep.mubr.msk.bf16.mxu1 %vm3395_vm0, %v3394_v0  ;;  %2913 = vmatpush3.bf16.msra.mxu1 %v1593_v10  ;;  %v1369_v10 = vshll.u32 %v3118_v3, 16 }
  0xf2   : > { %2934 = vmatprep.subr.bf16.mxu0 %v3394_v0  ;;  %2956 = vmatprep.subr.bf16.mxu1 %v3394_v0  ;;  %v1564_v18 = vrot.slane %v1562_v12, 1 }
  0xf3   : > { %v1371_v16 = vrot.slane %v1369_v10, 1 }
  0xf4   : > { %v1565_v24 = vsel %vm654_vm3, %v1560_v17, %v1564_v18  ;;  %v1568_v31 = vor.u32 %v1566_v25, %v1564_v18 }
  0xf6   : > { %v1573_v35 = vsel %vm654_vm3, %v1568_v31, %v1572_v32 }
  0xf7   : > { %2853 = vmatmul.mubr.msk.bf16.gmra.mrb[44].mxu0 %vm364_vm2, %v3105_v14  ;;  %2875 = vmatmul.mubr.msk.bf16.gmra.mrb[44].mxu1 %vm364_vm2, %v1171_v15  ;;  %v3120_v14 = vld [vmem:[%s3638_s19 + $0x24] sm:$0x1f]   ;;  %v1367_v15 = vor.u32 %v1365_v7, %v1363_v62 }
  0xf8   : > { %2856 = vmatprep.mubr.msk.bf16.mxu0 %vm3395_vm0, %v3394_v0  ;;  %2878 = vmatprep.mubr.msk.bf16.mxu1 %vm3395_vm0, %v3394_v0 }
  0xf9   : > { %v1372_v23 = vsel %vm654_vm3, %v1367_v15, %v1371_v16 }
  0xff   : > { %2857 = vmatmul.mubr.msk.bf16.gmra.mrb[48].mxu0 %vm364_vm2, %v3107_v21  ;;  %2879 = vmatmul.mubr.msk.bf16.gmra.mrb[48].mxu1 %vm364_vm2, %v1179_v22  ;;  %v1373_v21 = vshrl.u32 %v3118_v3, 16  ;;  %v1377_v22 = vshll.u32 %v3120_v14, 16 }
 0x100   : > { %2860 = vmatprep.mubr.msk.bf16.mxu0 %vm3395_vm0, %v3394_v0  ;;  %2882 = vmatprep.mubr.msk.bf16.mxu1 %vm3395_vm0, %v3394_v0 }
 0x101   : > { %v1375_v29 = vor.u32 %v1373_v21, %v1371_v16  ;;  %v1379_v30 = vrot.slane %v1377_v22, 1 }
 0x103   : > { %v1380_v34 = vsel %vm654_vm3, %v1375_v29, %v1379_v30 }
 0x107   : > { %2861 = vmatmul.mubr.msk.bf16.gmra.mrb[52].mxu0 %vm364_vm2, %v3109_v27  ;;  %2883 = vmatmul.mubr.msk.bf16.gmra.mrb[52].mxu1 %vm364_vm2, %v1187_v28  ;;  %v1919_v27 = vld [vmem:[#allocation3 + $0x28] sm:$0xff]  ;;  %v1920_v28 = vld [vmem:[#allocation3 + $0x30] sm:$0xff] }
 0x108   : > { %2864 = vmatprep.mubr.msk.bf16.mxu0 %vm3395_vm0, %v3394_v0  ;;  %2886 = vmatprep.mubr.msk.bf16.mxu1 %vm3395_vm0, %v3394_v0 }
 0x109   : > { %1950 = vperm.xlu1 %3081, %v1919_v27   ;;  %1955 = vperm.xlu0 %3080, %v1920_v28  }
 0x10d   : > { %1965 = vperm.xlu0 %3080, %v1922_v33  }
 0x10f   : > { %2865 = vmatmul.mubr.msk.bf16.gmra.mrb[56].mxu0 %vm364_vm2, %v3111_v36  ;;  %2887 = vmatmul.mubr.msk.bf16.gmra.mrb[56].mxu1 %vm364_vm2, %v1190_v37  ;;  %v1921_v36 = vld [vmem:[#allocation3 + $0x38] sm:$0xff]  ;;  %v1381_v37 = vshrl.u32 %v3120_v14, 16 }
 0x110   : > { %2892 = vmatprep.mubr.msk.bf16.mxu0 %vm3395_vm0, %v3394_v0  ;;  %2914 = vmatprep.mubr.msk.bf16.mxu1 %vm3395_vm0, %v3394_v0 }
 0x111   : > { %1960 = vperm.xlu1 %3081, %v1921_v36   ;;  %v1383_v39 = vor.u32 %v1381_v37, %v1379_v30 }
 0x117   : > { %2893 = vmatmul.mubr.msk.bf16.vlgmr.msra.gmra.mrb[60].mxu0 %vm364_vm2, %v1356_v54  ;;  %2915 = vmatmul.mubr.msk.bf16.vlgmr.msra.gmra.mrb[60].mxu1 %vm364_vm2, %v1549_v55  ;;  %v1738_v54 = vsel %vm1731_vm4, %v1735_v48, %v1737_v52  ;;  %v3129_v55 = vld [vmem:[%s3638_s19 + $0x24] sm:$0x1f]  }
 0x118   : > { %2935 = vmatpush3.bf16.msra.mxu0 %v1757_v58  ;;  %2896 = vmatprep.mubr.msk.bf16.mxu0 %vm3395_vm0, %v3394_v0  ;;  %v1739_v56 = vrot.slane %v3129_v55, 1 }
 0x119   : > { %2918 = vmatprep.mubr.msk.bf16.mxu1 %vm3395_vm0, %v3394_v0  ;;  %2957 = vmatpush3.bf16.msra.mxu1 %v2084_v59  ;;  %v3131_v59 = vld [vmem:[%s3638_s19 + $0xb0] ss:$0 sps:$4 sm:$0xff]  }
 0x11a   : > { %v1740_v58 = vsel %vm1731_vm4, %v1737_v52, %v1739_v56 }
 0x11f   : > { %2897 = vmatmul.mubr.msk.bf16.gmra.mrb[64].mxu0 %vm364_vm2, %v1364_v6  ;;  %2919 = vmatmul.mubr.msk.bf16.gmra.mrb[64].mxu1 %vm364_vm2, %v1557_v9 }
 0x120   : > { %2900 = vmatprep.mubr.msk.bf16.mxu0 %vm3395_vm0, %v3394_v0  ;;  %2922 = vmatprep.mubr.msk.bf16.mxu1 %vm3395_vm0, %v3394_v0 }
 0x127   : > { %2901 = vmatmul.mubr.msk.bf16.gmra.mrb[68].mxu0 %vm364_vm2, %v1372_v23  ;;  %2923 = vmatmul.mubr.msk.bf16.gmra.mrb[68].mxu1 %vm364_vm2, %v1565_v24 }
 0x128   : > { %2904 = vmatprep.mubr.msk.bf16.mxu0 %vm3395_vm0, %v3394_v0  ;;  %2926 = vmatprep.mubr.msk.bf16.mxu1 %vm3395_vm0, %v3394_v0 }
 0x12f   : > { %2905 = vmatmul.mubr.msk.bf16.gmra.mrb[72].mxu0 %vm364_vm2, %v1380_v34  ;;  %2927 = vmatmul.mubr.msk.bf16.gmra.mrb[72].mxu1 %vm364_vm2, %v1573_v35 }
 0x130   : > { %2908 = vmatprep.mubr.msk.bf16.mxu0 %vm3395_vm0, %v3394_v0  ;;  %2930 = vmatprep.mubr.msk.bf16.mxu1 %vm3395_vm0, %v3394_v0 }
 0x137   : > { %2909 = vmatmul.mubr.msk.bf16.gmra.mrb[76].mxu0 %vm364_vm2, %v1383_v39  ;;  %2931 = vmatmul.mubr.msk.bf16.gmra.mrb[76].mxu1 %vm364_vm2, %v1576_v40 }
 0x138   : > { %2936 = vmatprep.mubr.msk.bf16.mxu0 %vm3395_vm0, %v3394_v0  ;;  %2958 = vmatprep.mubr.msk.bf16.mxu1 %vm3395_vm0, %v3394_v0 }
 0x13f   : > { %2937 = vmatmul.mubr.msk.bf16.vlgmr.msra.gmra.mrb[80].mxu0 %vm364_vm2, %v1734_v46  ;;  %2959 = vmatmul.mubr.msk.bf16.vlgmr.msra.gmra.mrb[80].mxu1 %vm364_vm2, %v3124_v45 }
 0x140   : > { %2940 = vmatprep.mubr.msk.bf16.mxu0 %vm3395_vm0, %v3394_v0  ;;  %2962 = vmatprep.mubr.msk.bf16.mxu1 %vm3395_vm0, %v3394_v0 }
 0x147   : > { %2941 = vmatmul.mubr.msk.bf16.gmra.mrb[84].mxu0 %vm364_vm2, %v1736_v50  ;;  %2963 = vmatmul.mubr.msk.bf16.gmra.mrb[84].mxu1 %vm364_vm2, %v3126_v49 }
 0x148   : > { %2944 = vmatprep.mubr.msk.bf16.mxu0 %vm3395_vm0, %v3394_v0  ;;  %2966 = vmatprep.mubr.msk.bf16.mxu1 %vm3395_vm0, %v3394_v0 }
 0x14f   : > { %2945 = vmatmul.mubr.msk.bf16.gmra.mrb[88].mxu0 %vm364_vm2, %v1738_v54  ;;  %2967 = vmatmul.mubr.msk.bf16.gmra.mrb[88].mxu1 %vm364_vm2, %v3128_v53 }
 0x150   : > { %2948 = vmatprep.mubr.msk.bf16.mxu0 %vm3395_vm0, %v3394_v0  ;;  %2970 = vmatprep.mubr.msk.bf16.mxu1 %vm3395_vm0, %v3394_v0 }
 0x157   : > { %2949 = vmatmul.mubr.msk.bf16.gmra.mrb[92].mxu0 %vm364_vm2, %v1740_v58  ;;  %2971 = vmatmul.mubr.msk.bf16.gmra.mrb[92].mxu1 %vm364_vm2, %v3130_v57 }
 0x158   : > { %2952 = vmatprep.mubr.msk.bf16.mxu0 %vm3395_vm0, %v3394_v0  ;;  %2974 = vmatprep.mubr.msk.bf16.mxu1 %vm3395_vm0, %v3394_v0 }
 0x15f   : > { %2953 = vmatmul.mubr.msk.bf16.gmra.mrb[96].mxu0 %vm364_vm2, %v1739_v56  ;;  %2975 = vmatmul.mubr.msk.bf16.gmra.mrb[96].mxu1 %vm364_vm2, %v3131_v59 }
 0x172   : > { %v418_v60 = vpop.f32.mrb[0].mxu0  ;;  %v552_v61 = vpop.f32.mrb[0].mxu1 }
 0x173   : > { %456 = vst.msk [vmem:[#allocation2] sm:$0xff] %vm364_vm2, %v418_v60  ;;  %v2762_v62 = vpop.f32.mrb[1].mxu0  ;;  %v2784_v63 = vpop.f32.mrb[1].mxu1 }
 0x174   : > { %v421_v1 = vpop.f32.mrb[2].mxu0  ;;  %v555_v2 = vpop.f32.mrb[2].mxu1 }
 0x175   : > { %457 = vst.msk [vmem:[#allocation2 + $0x8] sm:$0xff] %vm364_vm2, %v421_v1  ;;  %v2763_v3 = vpop.f32.mrb[3].mxu0  ;;  %v2785_v4 = vpop.f32.mrb[3].mxu1 }
 0x17a   : > { %v426_v5 = vpop.f32.mrb[4].mxu0  ;;  %v590_v6 = vld [vmem:[#allocation2] sm:$0xff]  ;;  %v560_v0 = vpop.f32.mrb[4].mxu1 }
 0x17b   : > { %458 = vst.msk [vmem:[#allocation2 + $0x10] sm:$0xff] %vm364_vm2, %v426_v5  ;;  %v599_v7 = vadd.f32 %v590_v6, %v552_v61  ;;  %v2766_v8 = vpop.f32.mrb[5].mxu0  ;;  %v2788_v9 = vpop.f32.mrb[5].mxu1 }
 0x17c   : > { %v429_v10 = vpop.f32.mrb[6].mxu0  ;;  %v591_v11 = vld [vmem:[#allocation2 + $0x8] sm:$0xff]  ;;  %v563_v12 = vpop.f32.mrb[6].mxu1 }
 0x17d   : > { %608 = vst.msk [vmem:[#allocation2] sm:$0xff] %vm364_vm2, %v599_v7  ;;  %459 = vst.msk [vmem:[#allocation2 + $0x18] sm:$0xff] %vm364_vm2, %v429_v10  ;;  %v600_v13 = vadd.f32 %v591_v11, %v555_v2  ;;  %v2767_v14 = vpop.f32.mrb[7].mxu0  ;;  %v2789_v15 = vpop.f32.mrb[7].mxu1 }
 0x17f   : > { %609 = vst.msk [vmem:[#allocation2 + $0x8] sm:$0xff] %vm364_vm2, %v600_v13 }
 0x182   : > { %v434_v16 = vpop.f32.mrb[8].mxu0  ;;  %v592_v17 = vld [vmem:[#allocation2 + $0x10] sm:$0xff]  ;;  %v568_v18 = vpop.f32.mrb[8].mxu1 }
 0x183   : > { %460 = vst.msk [vmem:[#allocation2 + $0x20] sm:$0xff] %vm364_vm2, %v434_v16  ;;  %v601_v19 = vadd.f32 %v592_v17, %v560_v0  ;;  %v2770_v20 = vpop.f32.mrb[9].mxu0  ;;  %v2792_v21 = vpop.f32.mrb[9].mxu1 }
 0x184   : > { %v437_v22 = vpop.f32.mrb[10].mxu0  ;;  %v593_v23 = vld [vmem:[#allocation2 + $0x18] sm:$0xff]  ;;  %v571_v24 = vpop.f32.mrb[10].mxu1  ;;  %v784_v54 = vld [vmem:[#allocation2] sm:$0xff] }
 0x185   : > { %610 = vst.msk [vmem:[#allocation2 + $0x10] sm:$0xff] %vm364_vm2, %v601_v19  ;;  %461 = vst.msk [vmem:[#allocation2 + $0x28] sm:$0xff] %vm364_vm2, %v437_v22  ;;  %v602_v25 = vadd.f32 %v593_v23, %v563_v12  ;;  %v2771_v26 = vpop.f32.mrb[11].mxu0  ;;  %v2793_v27 = vpop.f32.mrb[11].mxu1 }
 0x186   : > { %v785_v61 = vld [vmem:[#allocation2 + $0x8] sm:$0xff] }
 0x187   : > { %611 = vst.msk [vmem:[#allocation2 + $0x18] sm:$0xff] %vm364_vm2, %v602_v25 }
 0x18a   : > { %v442_v28 = vpop.f32.mrb[12].mxu0  ;;  %v594_v29 = vld [vmem:[#allocation2 + $0x20] sm:$0xff]  ;;  %v576_v30 = vpop.f32.mrb[12].mxu1 }
 0x18b   : > { %462 = vst.msk [vmem:[#allocation2 + $0x30] sm:$0xff] %vm364_vm2, %v442_v28  ;;  %v603_v31 = vadd.f32 %v594_v29, %v568_v18  ;;  %v2774_v32 = vpop.f32.mrb[13].mxu0  ;;  %v2796_v33 = vpop.f32.mrb[13].mxu1 }
 0x18c   : > { %v445_v34 = vpop.f32.mrb[14].mxu0  ;;  %v595_v35 = vld [vmem:[#allocation2 + $0x28] sm:$0xff]  ;;  %v579_v36 = vpop.f32.mrb[14].mxu1  ;;  %v786_v4 = vld [vmem:[#allocation2 + $0x10] sm:$0xff] }
 0x18d   : > { %612 = vst.msk [vmem:[#allocation2 + $0x20] sm:$0xff] %vm364_vm2, %v603_v31  ;;  %463 = vst.msk [vmem:[#allocation2 + $0x38] sm:$0xff] %vm364_vm2, %v445_v34  ;;  %v604_v37 = vadd.f32 %v595_v35, %v571_v24  ;;  %v2775_v38 = vpop.f32.mrb[15].mxu0  ;;  %v2797_v39 = vpop.f32.mrb[15].mxu1 }
 0x18e   : > { %v787_v10 = vld [vmem:[#allocation2 + $0x18] sm:$0xff] }
 0x18f   : > { %613 = vst.msk [vmem:[#allocation2 + $0x28] sm:$0xff] %vm364_vm2, %v604_v37 }
 0x192   : > { %v450_v40 = vpop.f32.mrb[16].mxu0  ;;  %v596_v41 = vld [vmem:[#allocation2 + $0x30] sm:$0xff]  ;;  %v584_v42 = vpop.f32.mrb[16].mxu1 }
 0x193   : > { %464 = vst.msk [vmem:[#allocation2 + $0x40] sm:$0xff] %vm364_vm2, %v450_v40  ;;  %v605_v43 = vadd.f32 %v596_v41, %v576_v30  ;;  %v2778_v44 = vpop.f32.mrb[17].mxu0  ;;  %v2800_v45 = vpop.f32.mrb[17].mxu1 }
 0x194   : > { %v453_v46 = vpop.f32.mrb[18].mxu0  ;;  %v597_v47 = vld [vmem:[#allocation2 + $0x38] sm:$0xff]  ;;  %v587_v48 = vpop.f32.mrb[18].mxu1  ;;  %v788_v19 = vld [vmem:[#allocation2 + $0x20] sm:$0xff] }
 0x195   : > { %614 = vst.msk [vmem:[#allocation2 + $0x30] sm:$0xff] %vm364_vm2, %v605_v43  ;;  %v606_v49 = vadd.f32 %v597_v47, %v579_v36  ;;  %v2779_v50 = vpop.f32.mrb[19].mxu0  ;;  %v2801_v51 = vpop.f32.mrb[19].mxu1 }
 0x196   : > { %v789_v26 = vld [vmem:[#allocation2 + $0x28] sm:$0xff] }
 0x197   : > { %615 = vst.msk [vmem:[#allocation2 + $0x38] sm:$0xff] %vm364_vm2, %v606_v49 }
 0x19a   : > { %v598_v52 = vld [vmem:[#allocation2 + $0x40] sm:$0xff]  ;;  %v746_v53 = vpop.f32.mrb[20].mxu0  ;;  %v898_v55 = vpop.f32.mrb[20].mxu1 }
 0x19b   : > { %v607_v56 = vadd.f32 %v598_v52, %v584_v42  ;;  %v793_v57 = vadd.f32 %v784_v54, %v746_v53  ;;  %v2806_v58 = vpop.f32.mrb[21].mxu0  ;;  %v2828_v59 = vpop.f32.mrb[21].mxu1 }
 0x19c   : > { %v749_v60 = vpop.f32.mrb[22].mxu0  ;;  %v901_v62 = vpop.f32.mrb[22].mxu1  ;;  %v790_v35 = vld [vmem:[#allocation2 + $0x30] sm:$0xff] }
 0x19d   : > { %616 = vst.msk [vmem:[#allocation2 + $0x40] sm:$0xff] %vm364_vm2, %v607_v56  ;;  %802 = vst.msk [vmem:[#allocation2] sm:$0xff] %vm364_vm2, %v793_v57  ;;  %v794_v63 = vadd.f32 %v785_v61, %v749_v60  ;;  %v2807_v1 = vpop.f32.mrb[23].mxu0  ;;  %v2829_v2 = vpop.f32.mrb[23].mxu1 }
 0x19e   : > { %v791_v42 = vld [vmem:[#allocation2 + $0x38] sm:$0xff] }
 0x19f   : > { %803 = vst.msk [vmem:[#allocation2 + $0x8] sm:$0xff] %vm364_vm2, %v794_v63 }
 0x1a2   : > { %v754_v3 = vpop.f32.mrb[24].mxu0  ;;  %v906_v5 = vpop.f32.mrb[24].mxu1 }
 0x1a3   : > { %v795_v6 = vadd.f32 %v786_v4, %v754_v3  ;;  %v2810_v0 = vpop.f32.mrb[25].mxu0  ;;  %v2832_v7 = vpop.f32.mrb[25].mxu1 }
 0x1a4   : > { %v936_v8 = vld [vmem:[#allocation2] sm:$0xff]  ;;  %v757_v9 = vpop.f32.mrb[26].mxu0  ;;  %v909_v11 = vpop.f32.mrb[26].mxu1 }
 0x1a5   : > { %804 = vst.msk [vmem:[#allocation2 + $0x10] sm:$0xff] %vm364_vm2, %v795_v6  ;;  %v945_v12 = vadd.f32 %v936_v8, %v898_v55  ;;  %v796_v13 = vadd.f32 %v787_v10, %v757_v9  ;;  %v2811_v14 = vpop.f32.mrb[27].mxu0  ;;  %v2833_v15 = vpop.f32.mrb[27].mxu1  ;;  %v792_v51 = vld [vmem:[#allocation2 + $0x40] sm:$0xff] }
 0x1a6   : > { %v937_v16 = vld [vmem:[#allocation2 + $0x8] sm:$0xff] }
 0x1a7   : > { %954 = vst.msk [vmem:[#allocation2] sm:$0xff] %vm364_vm2, %v945_v12  ;;  %805 = vst.msk [vmem:[#allocation2 + $0x18] sm:$0xff] %vm364_vm2, %v796_v13  ;;  %v946_v17 = vadd.f32 %v937_v16, %v901_v62 }
 0x1a9   : > { %955 = vst.msk [vmem:[#allocation2 + $0x8] sm:$0xff] %vm364_vm2, %v946_v17 }
 0x1aa   : > { %v762_v18 = vpop.f32.mrb[28].mxu0  ;;  %v914_v20 = vpop.f32.mrb[28].mxu1 }
 0x1ab   : > { %v797_v21 = vadd.f32 %v788_v19, %v762_v18  ;;  %v2814_v22 = vpop.f32.mrb[29].mxu0  ;;  %v2836_v23 = vpop.f32.mrb[29].mxu1 }
 0x1ac   : > { %v938_v24 = vld [vmem:[#allocation2 + $0x10] sm:$0xff]  ;;  %v765_v25 = vpop.f32.mrb[30].mxu0  ;;  %v917_v27 = vpop.f32.mrb[30].mxu1 }
 0x1ad   : > { %806 = vst.msk [vmem:[#allocation2 + $0x20] sm:$0xff] %vm364_vm2, %v797_v21  ;;  %v947_v28 = vadd.f32 %v938_v24, %v906_v5  ;;  %v798_v29 = vadd.f32 %v789_v26, %v765_v25  ;;  %v2815_v30 = vpop.f32.mrb[31].mxu0  ;;  %v2837_v31 = vpop.f32.mrb[31].mxu1 }
 0x1ae   : > { %v939_v32 = vld [vmem:[#allocation2 + $0x18] sm:$0xff]  ;;  %v1088_v2 = vld [vmem:[#allocation2] sm:$0xff] }
 0x1af   : > { %956 = vst.msk [vmem:[#allocation2 + $0x10] sm:$0xff] %vm364_vm2, %v947_v28  ;;  %807 = vst.msk [vmem:[#allocation2 + $0x28] sm:$0xff] %vm364_vm2, %v798_v29  ;;  %v948_v33 = vadd.f32 %v939_v32, %v909_v11 }
 0x1b0   : > { %v1089_v8 = vld [vmem:[#allocation2 + $0x8] sm:$0xff] }
 0x1b1   : > { %957 = vst.msk [vmem:[#allocation2 + $0x18] sm:$0xff] %vm364_vm2, %v948_v33 }
 0x1b2   : > { %v770_v34 = vpop.f32.mrb[32].mxu0  ;;  %v922_v36 = vpop.f32.mrb[32].mxu1 }
 0x1b3   : > { %v799_v37 = vadd.f32 %v790_v35, %v770_v34  ;;  %v2818_v38 = vpop.f32.mrb[33].mxu0  ;;  %v2840_v39 = vpop.f32.mrb[33].mxu1 }
 0x1b4   : > { %v940_v40 = vld [vmem:[#allocation2 + $0x20] sm:$0xff]  ;;  %v773_v41 = vpop.f32.mrb[34].mxu0  ;;  %v925_v43 = vpop.f32.mrb[34].mxu1 }
 0x1b5   : > { %808 = vst.msk [vmem:[#allocation2 + $0x30] sm:$0xff] %vm364_vm2, %v799_v37  ;;  %v949_v44 = vadd.f32 %v940_v40, %v914_v20  ;;  %v800_v45 = vadd.f32 %v791_v42, %v773_v41  ;;  %v2819_v46 = vpop.f32.mrb[35].mxu0  ;;  %v2841_v47 = vpop.f32.mrb[35].mxu1 }
 0x1b6   : > { %v941_v48 = vld [vmem:[#allocation2 + $0x28] sm:$0xff]  ;;  %v1090_v15 = vld [vmem:[#allocation2 + $0x10] sm:$0xff] }
 0x1b7   : > { %958 = vst.msk [vmem:[#allocation2 + $0x20] sm:$0xff] %vm364_vm2, %v949_v44  ;;  %809 = vst.msk [vmem:[#allocation2 + $0x38] sm:$0xff] %vm364_vm2, %v800_v45  ;;  %v950_v49 = vadd.f32 %v941_v48, %v917_v27 }
 0x1b8   : > { %v1091_v22 = vld [vmem:[#allocation2 + $0x18] sm:$0xff] }
 0x1b9   : > { %959 = vst.msk [vmem:[#allocation2 + $0x28] sm:$0xff] %vm364_vm2, %v950_v49 }
 0x1ba   : > { %v778_v50 = vpop.f32.mrb[36].mxu0  ;;  %v930_v52 = vpop.f32.mrb[36].mxu1 }
 0x1bb   : > { %v801_v53 = vadd.f32 %v792_v51, %v778_v50  ;;  %v2822_v54 = vpop.f32.mrb[37].mxu0  ;;  %v2844_v55 = vpop.f32.mrb[37].mxu1 }
 0x1bc   : > { %v942_v56 = vld [vmem:[#allocation2 + $0x30] sm:$0xff]  ;;  %v781_v57 = vpop.f32.mrb[38].mxu0  ;;  %v933_v58 = vpop.f32.mrb[38].mxu1 }
 0x1bd   : > { %810 = vst.msk [vmem:[#allocation2 + $0x40] sm:$0xff] %vm364_vm2, %v801_v53  ;;  %v951_v59 = vadd.f32 %v942_v56, %v922_v36  ;;  %v2823_v60 = vpop.f32.mrb[39].mxu0  ;;  %v2845_v61 = vpop.f32.mrb[39].mxu1 }
 0x1be   : > { %v943_v62 = vld [vmem:[#allocation2 + $0x38] sm:$0xff]  ;;  %v1092_v31 = vld [vmem:[#allocation2 + $0x20] sm:$0xff] }
 0x1bf   : > { %960 = vst.msk [vmem:[#allocation2 + $0x30] sm:$0xff] %vm364_vm2, %v951_v59  ;;  %v952_v63 = vadd.f32 %v943_v62, %v925_v43 }
 0x1c0   : > { %v1093_v38 = vld [vmem:[#allocation2 + $0x28] sm:$0xff] }
 0x1c1   : > { %961 = vst.msk [vmem:[#allocation2 + $0x38] sm:$0xff] %vm364_vm2, %v952_v63 }
 0x1c2   : > { %v1050_v1 = vpop.f32.mrb[40].mxu0  ;;  %v1243_v3 = vpop.f32.mrb[40].mxu1 }
 0x1c3   : > { %v1097_v4 = vadd.f32 %v1088_v2, %v1050_v1  ;;  %v2850_v5 = vpop.f32.mrb[41].mxu0  ;;  %v2872_v6 = vpop.f32.mrb[41].mxu1 }
 0x1c4   : > { %v944_v0 = vld [vmem:[#allocation2 + $0x40] sm:$0xff]  ;;  %v1053_v7 = vpop.f32.mrb[42].mxu0  ;;  %v1246_v9 = vpop.f32.mrb[42].mxu1 }
 0x1c5   : > { %v953_v10 = vadd.f32 %v944_v0, %v930_v52  ;;  %1106 = vst.msk [vmem:[#allocation2] sm:$0xff] %vm364_vm2, %v1097_v4  ;;  %v1098_v11 = vadd.f32 %v1089_v8, %v1053_v7  ;;  %v2851_v12 = vpop.f32.mrb[43].mxu0  ;;  %v2873_v13 = vpop.f32.mrb[43].mxu1 }
 0x1c6   : > { %v1094_v47 = vld [vmem:[#allocation2 + $0x30] sm:$0xff] }
 0x1c7   : > { %962 = vst.msk [vmem:[#allocation2 + $0x40] sm:$0xff] %vm364_vm2, %v953_v10  ;;  %1107 = vst.msk [vmem:[#allocation2 + $0x8] sm:$0xff] %vm364_vm2, %v1098_v11 }
 0x1c8   : > { %v1095_v54 = vld [vmem:[#allocation2 + $0x38] sm:$0xff] }
 0x1ca   : > { %v1058_v14 = vpop.f32.mrb[44].mxu0  ;;  %v1251_v16 = vpop.f32.mrb[44].mxu1 }
 0x1cb   : > { %v1099_v17 = vadd.f32 %v1090_v15, %v1058_v14  ;;  %v2854_v18 = vpop.f32.mrb[45].mxu0  ;;  %v2876_v19 = vpop.f32.mrb[45].mxu1 }
 0x1cc   : > { %v1281_v20 = vld [vmem:[#allocation2] sm:$0xff]  ;;  %v1061_v21 = vpop.f32.mrb[46].mxu0  ;;  %v1254_v23 = vpop.f32.mrb[46].mxu1 }
 0x1cd   : > { %1108 = vst.msk [vmem:[#allocation2 + $0x10] sm:$0xff] %vm364_vm2, %v1099_v17  ;;  %v1290_v24 = vadd.f32 %v1281_v20, %v1243_v3  ;;  %v1100_v25 = vadd.f32 %v1091_v22, %v1061_v21  ;;  %v2855_v26 = vpop.f32.mrb[47].mxu0  ;;  %v2877_v27 = vpop.f32.mrb[47].mxu1 }
 0x1ce   : > { %v1282_v28 = vld [vmem:[#allocation2 + $0x8] sm:$0xff]  ;;  %v1096_v63 = vld [vmem:[#allocation2 + $0x40] sm:$0xff] }
 0x1cf   : > { %1299 = vst.msk [vmem:[#allocation2] sm:$0xff] %vm364_vm2, %v1290_v24  ;;  %1109 = vst.msk [vmem:[#allocation2 + $0x18] sm:$0xff] %vm364_vm2, %v1100_v25  ;;  %v1291_v29 = vadd.f32 %v1282_v28, %v1246_v9 }
 0x1d1   : > { %1300 = vst.msk [vmem:[#allocation2 + $0x8] sm:$0xff] %vm364_vm2, %v1291_v29 }
 0x1d2   : > { %v1066_v30 = vpop.f32.mrb[48].mxu0  ;;  %v1259_v32 = vpop.f32.mrb[48].mxu1 }
 0x1d3   : > { %v1101_v33 = vadd.f32 %v1092_v31, %v1066_v30  ;;  %v2858_v34 = vpop.f32.mrb[49].mxu0  ;;  %v2880_v35 = vpop.f32.mrb[49].mxu1 }
 0x1d4   : > { %v1283_v36 = vld [vmem:[#allocation2 + $0x10] sm:$0xff]  ;;  %v1069_v37 = vpop.f32.mrb[50].mxu0  ;;  %v1262_v39 = vpop.f32.mrb[50].mxu1 }
 0x1d5   : > { %1110 = vst.msk [vmem:[#allocation2 + $0x20] sm:$0xff] %vm364_vm2, %v1101_v33  ;;  %v1292_v40 = vadd.f32 %v1283_v36, %v1251_v16  ;;  %v1102_v41 = vadd.f32 %v1093_v38, %v1069_v37  ;;  %v2859_v42 = vpop.f32.mrb[51].mxu0  ;;  %v2881_v43 = vpop.f32.mrb[51].mxu1 }
 0x1d6   : > { %v1284_v44 = vld [vmem:[#allocation2 + $0x18] sm:$0xff]  ;;  %v1474_v13 = vld [vmem:[#allocation2] sm:$0xff] }
 0x1d7   : > { %1301 = vst.msk [vmem:[#allocation2 + $0x10] sm:$0xff] %vm364_vm2, %v1292_v40  ;;  %1111 = vst.msk [vmem:[#allocation2 + $0x28] sm:$0xff] %vm364_vm2, %v1102_v41  ;;  %v1293_v45 = vadd.f32 %v1284_v44, %v1254_v23 }
 0x1d8   : > { %v1475_v20 = vld [vmem:[#allocation2 + $0x8] sm:$0xff] }
 0x1d9   : > { %1302 = vst.msk [vmem:[#allocation2 + $0x18] sm:$0xff] %vm364_vm2, %v1293_v45 }
 0x1da   : > { %v1074_v46 = vpop.f32.mrb[52].mxu0  ;;  %v1267_v48 = vpop.f32.mrb[52].mxu1 }
 0x1db   : > { %v1103_v49 = vadd.f32 %v1094_v47, %v1074_v46  ;;  %v2862_v50 = vpop.f32.mrb[53].mxu0  ;;  %v2884_v51 = vpop.f32.mrb[53].mxu1 }
 0x1dc   : > { %v1285_v52 = vld [vmem:[#allocation2 + $0x20] sm:$0xff]  ;;  %v1077_v53 = vpop.f32.mrb[54].mxu0  ;;  %v1270_v55 = vpop.f32.mrb[54].mxu1 }
 0x1dd   : > { %1112 = vst.msk [vmem:[#allocation2 + $0x30] sm:$0xff] %vm364_vm2, %v1103_v49  ;;  %v1294_v56 = vadd.f32 %v1285_v52, %v1259_v32  ;;  %v1104_v57 = vadd.f32 %v1095_v54, %v1077_v53  ;;  %v2863_v58 = vpop.f32.mrb[55].mxu0  ;;  %v2885_v59 = vpop.f32.mrb[55].mxu1 }
 0x1de   : > { %v1286_v60 = vld [vmem:[#allocation2 + $0x28] sm:$0xff]  ;;  %v1476_v27 = vld [vmem:[#allocation2 + $0x10] sm:$0xff] }
 0x1df   : > { %1303 = vst.msk [vmem:[#allocation2 + $0x20] sm:$0xff] %vm364_vm2, %v1294_v56  ;;  %1113 = vst.msk [vmem:[#allocation2 + $0x38] sm:$0xff] %vm364_vm2, %v1104_v57  ;;  %v1295_v61 = vadd.f32 %v1286_v60, %v1262_v39 }
 0x1e0   : > { %v1477_v34 = vld [vmem:[#allocation2 + $0x18] sm:$0xff] }
 0x1e1   : > { %1304 = vst.msk [vmem:[#allocation2 + $0x28] sm:$0xff] %vm364_vm2, %v1295_v61 }
 0x1e2   : > { %v1082_v62 = vpop.f32.mrb[56].mxu0  ;;  %v1275_v1 = vpop.f32.mrb[56].mxu1 }
 0x1e3   : > { %v1105_v2 = vadd.f32 %v1096_v63, %v1082_v62  ;;  %v2866_v3 = vpop.f32.mrb[57].mxu0  ;;  %v2888_v4 = vpop.f32.mrb[57].mxu1 }
 0x1e4   : > { %v1287_v5 = vld [vmem:[#allocation2 + $0x30] sm:$0xff]  ;;  %v1085_v6 = vpop.f32.mrb[58].mxu0  ;;  %v1278_v0 = vpop.f32.mrb[58].mxu1 }
 0x1e5   : > { %1114 = vst.msk [vmem:[#allocation2 + $0x40] sm:$0xff] %vm364_vm2, %v1105_v2  ;;  %v1296_v7 = vadd.f32 %v1287_v5, %v1267_v48  ;;  %v2867_v8 = vpop.f32.mrb[59].mxu0  ;;  %v2889_v9 = vpop.f32.mrb[59].mxu1 }
 0x1e6   : > { %v1288_v10 = vld [vmem:[#allocation2 + $0x38] sm:$0xff]  ;;  %v1478_v43 = vld [vmem:[#allocation2 + $0x20] sm:$0xff] }
 0x1e7   : > { %1305 = vst.msk [vmem:[#allocation2 + $0x30] sm:$0xff] %vm364_vm2, %v1296_v7  ;;  %v1297_v11 = vadd.f32 %v1288_v10, %v1270_v55  ;;  %v3960_v10 = vpop.permute.xlu0 %1925 }
 0x1e8   : > { %v1479_v50 = vld [vmem:[#allocation2 + $0x28] sm:$0xff] }
 0x1e9   : > { %1306 = vst.msk [vmem:[#allocation2 + $0x38] sm:$0xff] %vm364_vm2, %v1297_v11 }
 0x1ea   : > { %v1436_v12 = vpop.f32.mrb[60].mxu0  ;;  %v1629_v14 = vpop.f32.mrb[60].mxu1 }
 0x1eb   : > { %v1483_v15 = vadd.f32 %v1474_v13, %v1436_v12  ;;  %v2894_v16 = vpop.f32.mrb[61].mxu0  ;;  %v2916_v17 = vpop.f32.mrb[61].mxu1 }
 0x1ec   : > { %v1289_v18 = vld [vmem:[#allocation2 + $0x40] sm:$0xff]  ;;  %v1439_v19 = vpop.f32.mrb[62].mxu0  ;;  %v1632_v21 = vpop.f32.mrb[62].mxu1 }
 0x1ed   : > { %v1298_v22 = vadd.f32 %v1289_v18, %v1275_v1  ;;  %1492 = vst.msk [vmem:[#allocation2] sm:$0xff] %vm364_vm2, %v1483_v15  ;;  %v1484_v23 = vadd.f32 %v1475_v20, %v1439_v19  ;;  %v2895_v24 = vpop.f32.mrb[63].mxu0  ;;  %v2917_v25 = vpop.f32.mrb[63].mxu1 }
 0x1ee   : > { %v1480_v59 = vld [vmem:[#allocation2 + $0x30] sm:$0xff]  ;;  %v3966_v25 = vpop.permute.xlu1 %1935 }
 0x1ef   : > { %1307 = vst.msk [vmem:[#allocation2 + $0x40] sm:$0xff] %vm364_vm2, %v1298_v22  ;;  %1493 = vst.msk [vmem:[#allocation2 + $0x8] sm:$0xff] %vm364_vm2, %v1484_v23 }
 0x1f0   : > { %v1481_v3 = vld [vmem:[#allocation2 + $0x38] sm:$0xff] }
 0x1f2   : > { %v1444_v26 = vpop.f32.mrb[64].mxu0  ;;  %v1637_v28 = vpop.f32.mrb[64].mxu1 }
 0x1f3   : > { %v1485_v29 = vadd.f32 %v1476_v27, %v1444_v26  ;;  %v2898_v30 = vpop.f32.mrb[65].mxu0  ;;  %v2920_v31 = vpop.f32.mrb[65].mxu1 }
 0x1f4   : > { %v1667_v32 = vld [vmem:[#allocation2] sm:$0xff]  ;;  %v1447_v33 = vpop.f32.mrb[66].mxu0  ;;  %v1640_v35 = vpop.f32.mrb[66].mxu1 }
 0x1f5   : > { %1494 = vst.msk [vmem:[#allocation2 + $0x10] sm:$0xff] %vm364_vm2, %v1485_v29  ;;  %v1676_v36 = vadd.f32 %v1667_v32, %v1629_v14  ;;  %v1486_v37 = vadd.f32 %v1477_v34, %v1447_v33  ;;  %v2899_v38 = vpop.f32.mrb[67].mxu0  ;;  %v2921_v39 = vpop.f32.mrb[67].mxu1 }
 0x1f6   : > { %v1668_v40 = vld [vmem:[#allocation2 + $0x8] sm:$0xff]  ;;  %v1482_v12 = vld [vmem:[#allocation2 + $0x40] sm:$0xff]  ;;  %v3968_v26 = vpop.permute.xlu0 %1930 }
 0x1f7   : > { %1685 = vst.msk [vmem:[#allocation2] sm:$0xff] %vm364_vm2, %v1676_v36  ;;  %1495 = vst.msk [vmem:[#allocation2 + $0x18] sm:$0xff] %vm364_vm2, %v1486_v37  ;;  %v1677_v41 = vadd.f32 %v1668_v40, %v1632_v21 }
 0x1f9   : > { %1686 = vst.msk [vmem:[#allocation2 + $0x8] sm:$0xff] %vm364_vm2, %v1677_v41 }
 0x1fa   : > { %v1452_v42 = vpop.f32.mrb[68].mxu0  ;;  %v1645_v44 = vpop.f32.mrb[68].mxu1 }
 0x1fb   : > { %v1487_v45 = vadd.f32 %v1478_v43, %v1452_v42  ;;  %v2902_v46 = vpop.f32.mrb[69].mxu0  ;;  %v2924_v47 = vpop.f32.mrb[69].mxu1 }
 0x1fc   : > { %v1669_v48 = vld [vmem:[#allocation2 + $0x10] sm:$0xff]  ;;  %v1455_v49 = vpop.f32.mrb[70].mxu0  ;;  %v1648_v51 = vpop.f32.mrb[70].mxu1 }
 0x1fd   : > { %1496 = vst.msk [vmem:[#allocation2 + $0x20] sm:$0xff] %vm364_vm2, %v1487_v45  ;;  %v1678_v52 = vadd.f32 %v1669_v48, %v1637_v28  ;;  %v1488_v53 = vadd.f32 %v1479_v50, %v1455_v49  ;;  %v2903_v54 = vpop.f32.mrb[71].mxu0  ;;  %v2925_v55 = vpop.f32.mrb[71].mxu1 }
 0x1fe   : > { %v1670_v56 = vld [vmem:[#allocation2 + $0x18] sm:$0xff]  ;;  %v1831_v28 = vld [vmem:[#allocation2] sm:$0xff] }
 0x1ff   : > { %1687 = vst.msk [vmem:[#allocation2 + $0x10] sm:$0xff] %vm364_vm2, %v1678_v52  ;;  %1497 = vst.msk [vmem:[#allocation2 + $0x28] sm:$0xff] %vm364_vm2, %v1488_v53  ;;  %v1679_v57 = vadd.f32 %v1670_v56, %v1640_v35 }
 0x200   : > { %v1832_v37 = vld [vmem:[#allocation2 + $0x8] sm:$0xff] }
 0x201   : > { %1688 = vst.msk [vmem:[#allocation2 + $0x18] sm:$0xff] %vm364_vm2, %v1679_v57 }
 0x202   : > { %v1460_v58 = vpop.f32.mrb[72].mxu0  ;;  %v1653_v60 = vpop.f32.mrb[72].mxu1 }
 0x203   : > { %v1489_v61 = vadd.f32 %v1480_v59, %v1460_v58  ;;  %v2906_v62 = vpop.f32.mrb[73].mxu0  ;;  %v2928_v63 = vpop.f32.mrb[73].mxu1 }
 0x204   : > { %v1671_v1 = vld [vmem:[#allocation2 + $0x20] sm:$0xff]  ;;  %v1463_v2 = vpop.f32.mrb[74].mxu0  ;;  %v1656_v4 = vpop.f32.mrb[74].mxu1 }
 0x205   : > { %1498 = vst.msk [vmem:[#allocation2 + $0x30] sm:$0xff] %vm364_vm2, %v1489_v61  ;;  %v1680_v5 = vadd.f32 %v1671_v1, %v1645_v44  ;;  %v1490_v6 = vadd.f32 %v1481_v3, %v1463_v2  ;;  %v2907_v0 = vpop.f32.mrb[75].mxu0  ;;  %v2929_v7 = vpop.f32.mrb[75].mxu1 }
 0x206   : > { %v1672_v8 = vld [vmem:[#allocation2 + $0x28] sm:$0xff]  ;;  %v1833_v53 = vld [vmem:[#allocation2 + $0x10] sm:$0xff] }
 0x207   : > { %1689 = vst.msk [vmem:[#allocation2 + $0x20] sm:$0xff] %vm364_vm2, %v1680_v5  ;;  %1499 = vst.msk [vmem:[#allocation2 + $0x38] sm:$0xff] %vm364_vm2, %v1490_v6  ;;  %v1681_v9 = vadd.f32 %v1672_v8, %v1648_v51  ;;  %v3986_v51 = vpop.permute.xlu1 %1940 }
 0x208   : > { %v1834_v1 = vld [vmem:[#allocation2 + $0x18] sm:$0xff] }
 0x209   : > { %1690 = vst.msk [vmem:[#allocation2 + $0x28] sm:$0xff] %vm364_vm2, %v1681_v9 }
 0x20a   : > { %v1468_v11 = vpop.f32.mrb[76].mxu0  ;;  %v1661_v13 = vpop.f32.mrb[76].mxu1 }
 0x20b   : > { %v1491_v14 = vadd.f32 %v1482_v12, %v1468_v11  ;;  %v2910_v15 = vpop.f32.mrb[77].mxu0  ;;  %v2932_v16 = vpop.f32.mrb[77].mxu1 }
 0x20c   : > { %v1673_v17 = vld [vmem:[#allocation2 + $0x30] sm:$0xff]  ;;  %v1471_v18 = vpop.f32.mrb[78].mxu0  ;;  %v1664_v19 = vpop.f32.mrb[78].mxu1 }
 0x20d   : > { %1500 = vst.msk [vmem:[#allocation2 + $0x40] sm:$0xff] %vm364_vm2, %v1491_v14  ;;  %v1682_v20 = vadd.f32 %v1673_v17, %v1653_v60  ;;  %v2911_v21 = vpop.f32.mrb[79].mxu0  ;;  %v2933_v22 = vpop.f32.mrb[79].mxu1 }
 0x20e   : > { %v1674_v23 = vld [vmem:[#allocation2 + $0x38] sm:$0xff]  ;;  %v4012_v21 = vpop.permute.xlu1 %1950 }
 0x20f   : > { %1691 = vst.msk [vmem:[#allocation2 + $0x30] sm:$0xff] %vm364_vm2, %v1682_v20  ;;  %v1683_v24 = vadd.f32 %v1674_v23, %v1656_v4  ;;  %v4010_v20 = vpop.permute.xlu0 %1945 }
 0x211   : > { %1692 = vst.msk [vmem:[#allocation2 + $0x38] sm:$0xff] %vm364_vm2, %v1683_v24 }
 0x212   : > { %v1793_v27 = vpop.f32.mrb[80].mxu0  ;;  %v2120_v29 = vpop.f32.mrb[80].mxu1 }
 0x213   : > { %v1840_v30 = vadd.f32 %v1831_v28, %v1793_v27  ;;  %v2938_v31 = vpop.f32.mrb[81].mxu0  ;;  %v2689_v32 = vpack.c.bf16 %v2120_v29, %v2120_v29  ;;  %v2204_v33 = vmul.f32 %v2120_v29, %v3960_v10  ;;  %v2960_v34 = vpop.f32.mrb[81].mxu1 }
 0x214   : > { %v1675_v35 = vld [vmem:[#allocation2 + $0x40] sm:$0xff]  ;;  %v1796_v36 = vpop.f32.mrb[82].mxu0  ;;  %v2123_v38 = vpop.f32.mrb[82].mxu1 }
 0x215   : > { %v1684_v39 = vadd.f32 %v1675_v35, %v1661_v13  ;;  %1849 = vst.msk [vmem:[#allocation2] sm:$0xff] %vm364_vm2, %v1840_v30  ;;  %v1841_v40 = vadd.f32 %v1832_v37, %v1796_v36  ;;  %v2939_v41 = vpop.f32.mrb[83].mxu0  ;;  %v2237_v42 = vmul.f32 %v2204_v33, %v2120_v29  ;;  %v2961_v43 = vpop.f32.mrb[83].mxu1  ;;  %v2213_v44 = vsel %vm364_vm2, %v2204_v33, 0.0 }
 0x216   : > { %2195 = vst.msk [vmem:[%s3974_s11] sm:$0xf] %vm1904_vm5, %v2689_v32  ;;  %v2690_v45 = vpack.c.bf16 %v2123_v38, %v2123_v38  ;;  %v2205_v46 = vmul.f32 %v2123_v38, %v3968_v26 }
 0x217   : > { %1693 = vst.msk [vmem:[#allocation2 + $0x40] sm:$0xff] %vm364_vm2, %v1684_v39  ;;  %1850 = vst.msk [vmem:[#allocation2 + $0x8] sm:$0xff] %vm364_vm2, %v1841_v40  ;;  %v2246_v47 = vsel %vm364_vm2, %v2237_v42, 0.0  ;;  %v1836_v39 = vld [vmem:[#allocation2 + $0x28] sm:$0xff] }
 0x218   : > { %2196 = vst.msk [vmem:[%s3974_s11 + $0x4] sm:$0xf] %vm1904_vm5, %v2690_v45  ;;  %v2214_v48 = vsel %vm364_vm2, %v2205_v46, 0.0  ;;  %v2238_v49 = vmul.f32 %v2205_v46, %v2123_v38 }
 0x219   : > { %v2215_v50 = vadd.f32 %v2214_v48, %v2213_v44 }
 0x21a   : > { %v1801_v52 = vpop.f32.mrb[84].mxu0  ;;  %v2247_v54 = vsel %vm364_vm2, %v2238_v49, 0.0  ;;  %v2128_v55 = vpop.f32.mrb[84].mxu1 }
 0x21b   : > { %v1842_v56 = vadd.f32 %v1833_v53, %v1801_v52  ;;  %v2942_v57 = vpop.f32.mrb[85].mxu0  ;;  %v2248_v58 = vadd.f32 %v2247_v54, %v2246_v47  ;;  %v2691_v59 = vpack.c.bf16 %v2128_v55, %v2128_v55  ;;  %v2206_v60 = vmul.f32 %v2128_v55, %v3966_v25  ;;  %v2964_v61 = vpop.f32.mrb[85].mxu1 }
 0x21c   : > { %v1858_v62 = vld [vmem:[#allocation2] sm:$0xff]  ;;  %v1804_v63 = vpop.f32.mrb[86].mxu0  ;;  %v2131_v2 = vpop.f32.mrb[86].mxu1 }
 0x21d   : > { %v2680_v3 = vpack.c.bf16 %v1858_v62, %v1858_v62  ;;  %v1968_v4 = vmul.f32 %v3960_v10, %v1858_v62  ;;  %1851 = vst.msk [vmem:[#allocation2 + $0x10] sm:$0xff] %vm364_vm2, %v1842_v56  ;;  %v1843_v5 = vadd.f32 %v1834_v1, %v1804_v63  ;;  %v2943_v6 = vpop.f32.mrb[87].mxu0  ;;  %v2216_v0 = vsel %vm364_vm2, %v2206_v60, 0.0  ;;  %v2965_v7 = vpop.f32.mrb[87].mxu1 }
 0x21e   : > { %2197 = vst.msk [vmem:[%s3974_s11 + $0x8] sm:$0xf] %vm1904_vm5, %v2691_v59  ;;  %v1859_v8 = vld [vmem:[#allocation2 + $0x8] sm:$0xff]  ;;  %v2217_v9 = vadd.f32 %v2216_v0, %v2215_v50  ;;  %v2239_v11 = vmul.f32 %v2206_v60, %v2128_v55  ;;  %v2692_v12 = vpack.c.bf16 %v2131_v2, %v2131_v2  ;;  %v2207_v13 = vmul.f32 %v2131_v2, %v3986_v51  ;;  %v4038_v1 = vpop.permute.xlu0 %1955  ;;  %v1837_v6 = vld [vmem:[#allocation2 + $0x30] sm:$0xff] }
 0x21f   : > { %1905 = vst.msk [vmem:[%s3998_s28] sm:$0xf] %vm1904_vm5, %v2680_v3  ;;  %v2681_v10 = vpack.c.bf16 %v1859_v8, %v1859_v8  ;;  %v1969_v14 = vmul.f32 %v3968_v26, %v1859_v8  ;;  %v2002_v15 = vmul.f32 %v1968_v4, %v1858_v62  ;;  %v1835_v26 = vld [vmem:[#allocation2 + $0x20] sm:$0xff]  ;;  %v1977_v34 = vsel %vm364_vm2, %v1968_v4, 0.0 }
 0x220   : > { %1852 = vst.msk [vmem:[#allocation2 + $0x18] sm:$0xff] %vm364_vm2, %v1843_v5  ;;  %v2249_v16 = vsel %vm364_vm2, %v2239_v11, 0.0  ;;  %v2218_v17 = vsel %vm364_vm2, %v2207_v13, 0.0  ;;  %v2240_v18 = vmul.f32 %v2207_v13, %v2131_v2 }
 0x221   : > { %2198 = vst.msk [vmem:[%s3974_s11 + $0xc] sm:$0xf] %vm1904_vm5, %v2692_v12  ;;  %1906 = vst.msk [vmem:[%s3998_s28 + $0x4] sm:$0xf] %vm1904_vm5, %v2681_v10  ;;  %v2250_v19 = vadd.f32 %v2249_v16, %v2248_v58  ;;  %v2219_v22 = vadd.f32 %v2218_v17, %v2217_v9  ;;  %v2003_v28 = vmul.f32 %v1969_v14, %v1859_v8  ;;  %v2011_v35 = vsel %vm364_vm2, %v2002_v15, 0.0 }
 0x222   : > { %v2251_v23 = vsel %vm364_vm2, %v2240_v18, 0.0  ;;  %v1809_v24 = vpop.f32.mrb[88].mxu0  ;;  %v2136_v27 = vpop.f32.mrb[88].mxu1  ;;  %v1978_v47 = vsel %vm364_vm2, %v1969_v14, 0.0 }
 0x223   : > { %v2252_v29 = vadd.f32 %v2251_v23, %v2250_v19  ;;  %v1844_v30 = vadd.f32 %v1835_v26, %v1809_v24  ;;  %v2693_v31 = vpack.c.bf16 %v2136_v27, %v2136_v27  ;;  %v2946_v32 = vpop.f32.mrb[89].mxu0  ;;  %v2968_v33 = vpop.f32.mrb[89].mxu1  ;;  %v2208_v37 = vmul.f32 %v2136_v27, %v4010_v20 }
 0x224   : > { %v1860_v36 = vld [vmem:[#allocation2 + $0x10] sm:$0xff]  ;;  %v1812_v38 = vpop.f32.mrb[90].mxu0  ;;  %v2139_v40 = vpop.f32.mrb[90].mxu1  ;;  %v2012_v53 = vsel %vm364_vm2, %v2003_v28, 0.0  ;;  %v1979_v61 = vadd.f32 %v1978_v47, %v1977_v34 }
 0x225   : > { %v2682_v41 = vpack.c.bf16 %v1860_v36, %v1860_v36  ;;  %v1970_v42 = vmul.f32 %v3966_v25, %v1860_v36  ;;  %1853 = vst.msk [vmem:[#allocation2 + $0x20] sm:$0xff] %vm364_vm2, %v1844_v30  ;;  %v1845_v43 = vadd.f32 %v1836_v39, %v1812_v38  ;;  %v2694_v44 = vpack.c.bf16 %v2139_v40, %v2139_v40  ;;  %v2947_v45 = vpop.f32.mrb[91].mxu0  ;;  %v2969_v46 = vpop.f32.mrb[91].mxu1 }
 0x226   : > { %2199 = vst.msk [vmem:[%s3974_s11 + $0x10] sm:$0xf] %vm1904_vm5, %v2693_v31  ;;  %v2220_v49 = vsel %vm364_vm2, %v2208_v37, 0.0  ;;  %v2241_v50 = vmul.f32 %v2208_v37, %v2136_v27  ;;  %v2209_v52 = vmul.f32 %v2139_v40, %v4012_v21  ;;  %v2013_v2 = vadd.f32 %v2012_v53, %v2011_v35  ;;  %v1838_v27 = vld [vmem:[#allocation2 + $0x38] sm:$0xff] }
 0x227   : > { %v1861_v48 = vld [vmem:[#allocation2 + $0x18] sm:$0xff]  ;;  %1907 = vst.msk [vmem:[%s3998_s28 + $0x8] sm:$0xf] %vm1904_vm5, %v2682_v41  ;;  %v2004_v25 = vmul.f32 %v1970_v42, %v1860_v36  ;;  %2200 = vst.msk [vmem:[%s3974_s11 + $0x14] sm:$0xf] %vm1904_vm5, %v2694_v44  ;;  %v1980_v56 = vsel %vm364_vm2, %v1970_v42, 0.0  ;;  %v2221_v57 = vadd.f32 %v2220_v49, %v2219_v22 }
 0x228   : > { %v2683_v54 = vpack.c.bf16 %v1861_v48, %v1861_v48  ;;  %v1971_v55 = vmul.f32 %v3986_v51, %v1861_v48  ;;  %1854 = vst.msk [vmem:[#allocation2 + $0x28] sm:$0xff] %vm364_vm2, %v1845_v43  ;;  %v2253_v58 = vsel %vm364_vm2, %v2241_v50, 0.0  ;;  %v2222_v59 = vsel %vm364_vm2, %v2209_v52, 0.0  ;;  %v4040_v51 = vpop.permute.xlu1 %1960  ;;  %v4064_v43 = vpop.permute.xlu0 %1965 }
 0x229   : > { %v2014_v60 = vsel %vm364_vm2, %v2004_v25, 0.0  ;;  %v2254_v63 = vadd.f32 %v2253_v58, %v2252_v29  ;;  %v2223_v3 = vadd.f32 %v2222_v59, %v2221_v57  ;;  %v2242_v4 = vmul.f32 %v2209_v52, %v2139_v40 }
 0x22a   : > { %1908 = vst.msk [vmem:[%s3998_s28 + $0xc] sm:$0xf] %vm1904_vm5, %v2683_v54  ;;  %v2005_v62 = vmul.f32 %v1971_v55, %v1861_v48  ;;  %v1817_v5 = vpop.f32.mrb[92].mxu0  ;;  %v2144_v0 = vpop.f32.mrb[92].mxu1  ;;  %v1981_v7 = vadd.f32 %v1980_v56, %v1979_v61  ;;  %v1982_v10 = vsel %vm364_vm2, %v1971_v55, 0.0  ;;  %v2015_v14 = vadd.f32 %v2014_v60, %v2013_v2  ;;  %v1839_v48 = vld [vmem:[#allocation2 + $0x40] sm:$0xff] }
 0x22b   : > { %v1846_v8 = vadd.f32 %v1837_v6, %v1817_v5  ;;  %v2695_v9 = vpack.c.bf16 %v2144_v0, %v2144_v0  ;;  %v2210_v11 = vmul.f32 %v2144_v0, %v4038_v1  ;;  %v2950_v12 = vpop.f32.mrb[93].mxu0  ;;  %v2972_v13 = vpop.f32.mrb[93].mxu1  ;;  %v2255_v17 = vsel %vm364_vm2, %v2242_v4, 0.0 }
 0x22c   : > { %v2016_v15 = vsel %vm364_vm2, %v2005_v62, 0.0  ;;  %v1862_v16 = vld [vmem:[#allocation2 + $0x20] sm:$0xff]  ;;  %v1820_v18 = vpop.f32.mrb[94].mxu0  ;;  %v2147_v19 = vpop.f32.mrb[94].mxu1  ;;  %v2256_v24 = vadd.f32 %v2255_v17, %v2254_v63  ;;  %v1983_v38 = vadd.f32 %v1982_v10, %v1981_v7 }
 0x22d   : > { %v2684_v22 = vpack.c.bf16 %v1862_v16, %v1862_v16  ;;  %v1972_v23 = vmul.f32 %v4010_v20, %v1862_v16  ;;  %1855 = vst.msk [vmem:[#allocation2 + $0x30] sm:$0xff] %vm364_vm2, %v1846_v8  ;;  %v2224_v26 = vsel %vm364_vm2, %v2210_v11, 0.0  ;;  %v2951_v28 = vpop.f32.mrb[95].mxu0  ;;  %v2973_v29 = vpop.f32.mrb[95].mxu1  ;;  %v2243_v32 = vmul.f32 %v2210_v11, %v2144_v0 }
 0x22e   : > { %2201 = vst.msk [vmem:[%s3974_s11 + $0x18] sm:$0xf] %vm1904_vm5, %v2695_v9  ;;  %v2225_v31 = vadd.f32 %v2224_v26, %v2223_v3  ;;  %v1847_v33 = vadd.f32 %v1838_v27, %v1820_v18  ;;  %v2696_v34 = vpack.c.bf16 %v2147_v19, %v2147_v19  ;;  %v2211_v37 = vmul.f32 %v2147_v19, %v4040_v51 }
 0x22f   : > { %v1863_v30 = vld [vmem:[#allocation2 + $0x28] sm:$0xff]  ;;  %1909 = vst.msk [vmem:[%s3998_s28 + $0x10] sm:$0xf] %vm1904_vm5, %v2684_v22  ;;  %v2006_v20 = vmul.f32 %v1972_v23, %v1862_v16  ;;  %v2257_v39 = vsel %vm364_vm2, %v2243_v32, 0.0  ;;  %v1984_v40 = vsel %vm364_vm2, %v1972_v23, 0.0  ;;  %v2017_v41 = vadd.f32 %v2016_v15, %v2015_v14 }
 0x230   : > { %v2685_v35 = vpack.c.bf16 %v1863_v30, %v1863_v30  ;;  %v1973_v36 = vmul.f32 %v4012_v21, %v1863_v30  ;;  %1856 = vst.msk [vmem:[#allocation2 + $0x38] sm:$0xff] %vm364_vm2, %v1847_v33  ;;  %v2258_v42 = vadd.f32 %v2257_v39, %v2256_v24  ;;  %v2226_v21 = vsel %vm364_vm2, %v2211_v37, 0.0 }
 0x231   : > { %2202 = vst.msk [vmem:[%s3974_s11 + $0x1c] sm:$0xf] %vm1904_vm5, %v2696_v34  ;;  %v2244_v44 = vmul.f32 %v2211_v37, %v2147_v19  ;;  %v2227_v46 = vadd.f32 %v2226_v21, %v2225_v31  ;;  %v1985_v50 = vadd.f32 %v1984_v40, %v1983_v38  ;;  %v2018_v52 = vsel %vm364_vm2, %v2006_v20, 0.0 }
 0x232   : > { %1910 = vst.msk [vmem:[%s3998_s28 + $0x14] sm:$0xf] %vm1904_vm5, %v2685_v35  ;;  %v2007_v45 = vmul.f32 %v1973_v36, %v1863_v30  ;;  %v1825_v47 = vpop.f32.mrb[96].mxu0  ;;  %v2152_v49 = vpop.f32.mrb[96].mxu1  ;;  %v1986_v62 = vsel %vm364_vm2, %v1973_v36, 0.0  ;;  %v2019_v63 = vadd.f32 %v2018_v52, %v2017_v41 }
 0x233   : > { %v2259_v25 = vsel %vm364_vm2, %v2244_v44, 0.0  ;;  %v1848_v53 = vadd.f32 %v1839_v48, %v1825_v47  ;;  %v2697_v54 = vpack.c.bf16 %v2152_v49, %v2152_v49  ;;  %v2212_v55 = vmul.f32 %v2152_v49, %v4064_v43  ;;  %v2954_v56 = vpop.f32.mrb[97].mxu0  ;;  %v2976_v57 = vpop.f32.mrb[97].mxu1 }
 0x234   : > { %v1864_v58 = vld [vmem:[#allocation2 + $0x30] sm:$0xff]  ;;  %v2260_v59 = vadd.f32 %v2259_v25, %v2258_v42  ;;  %v1828_v60 = vpop.f32.mrb[98].mxu0  ;;  %v2155_v61 = vpop.f32.mrb[98].mxu1 }
 0x235   : > { %v2686_v2 = vpack.c.bf16 %v1864_v58, %v1864_v58  ;;  %1857 = vst.msk [vmem:[#allocation2 + $0x40] sm:$0xff] %vm364_vm2, %v1848_v53  ;;  %v2228_v3 = vsel %vm364_vm2, %v2212_v55, 0.0  ;;  %v2245_v4 = vmul.f32 %v2212_v55, %v2152_v49  ;;  %v2955_v5 = vpop.f32.mrb[99].mxu0  ;;  %v2977_v6 = vpop.f32.mrb[99].mxu1  ;;  %v1974_v0 = vmul.f32 %v4038_v1, %v1864_v58 }
 0x236   : > { %2203 = vst.msk [vmem:[%s3974_s11 + $0x20] sm:$0xf] %vm1904_vm5, %v2697_v54  ;;  %v2229_v7 = vadd.f32 %v2228_v3, %v2227_v46 }
 0x237   : > { %3259 = shalt.err (!%p3256_p6)
}
 0x238   : > { %s3260_s29 = scalar_lea.hbm %s4075_s16, 576  ;;  %s3264_s14 = scalar_lea.hbm %s4223_s5, 1152 }
 0x239   : > { %p3261_p13 = scmp.ne.s32.totalorder %s4075_s16, %s3260_s29  ;;  %p3265_p9 = scmp.lt.u32.totalorder %s4075_s16, %s4223_s5 }
 0x23a   : > { %p3266_p10 = scmp.lt.u32.totalorder %s3264_s14, %s3260_s29  ;;  %p3268_p4 = scmp.lt.u32.totalorder %s3260_s29, %s4075_s16 }
 0x23b   : > { %p3262_p8 = pnand %p3261_p13, %p4264_p0 }
 0x23c   : > { %p3267_p1 = por %p3266_p10, %p3265_p9 }
 0x23d   : > { %p3263_p7 = pneg %p3262_p8 }
 0x23e   : > { %p3269_p2 = por %p3268_p4, %p3267_p1 }
 0x240   : > { %p3270_p5 = pnand %p3269_p2, %p3263_p7 }
 0x242   : > { %3273 = shalt.err (!%p3270_p5)
}
 0x243   : > { %s3398_s8 = smov 64   ;;  %s3399_s11 = smov 4   ;;  %v2020_v1 = vsel %vm364_vm2, %v2007_v45, 0.0  ;;  %1911 = vst.msk [vmem:[%s3998_s28 + $0x18] sm:$0xf] %vm1904_vm5, %v2686_v2  ;;  %v1865_v8 = vld [vmem:[#allocation2 + $0x38] sm:$0xff]  ;;  %v1987_v11 = vadd.f32 %v1986_v62, %v1985_v50  ;;  %v2008_v13 = vmul.f32 %v1974_v0, %v1864_v58 }
 0x244   : > { %2999 = dma.vmem_to_hbm [thread:$0]  (%p4264_p0), %s4077_s15, 576, %s4075_s16, %s4087_s2, %s3398_s8, %s3398_s8, %s3399_s11   ;;  %v2261_v9 = vsel %vm364_vm2, %v2245_v4, 0.0  ;;  %v1988_v12 = vsel %vm364_vm2, %v1974_v0, 0.0  ;;  %v2687_v10 = vpack.c.bf16 %v1865_v8, %v1865_v8  ;;  %v2230_v14 = vrot.slane %v2229_v7, 4  ;;  %v1866_v27 = vld [vmem:[#allocation2 + $0x40] sm:$0xff] }
 0x245   : > { %v2262_v15 = vadd.f32 %v2261_v9, %v2260_v59  ;;  %v1975_v16 = vmul.f32 %v4040_v51, %v1865_v8  ;;  %v2021_v17 = vadd.f32 %v2020_v1, %v2019_v63  ;;  %v2022_v18 = vsel %vm364_vm2, %v2008_v13, 0.0  ;;  %s2294_s15 = sshll.u32 %s3998_s28, 4  ;;  %s4130_s16 = scalar_lea.hbm %s4222_s4, %s2982_s12  ;;  %s4132_s15 = int_to_ptr.vmem [resolvable:$true] %s2294_s15 }
 0x246   : > { %1912 = vst.msk [vmem:[%s3998_s28 + $0x1c] sm:$0xf] %vm1904_vm5, %v2687_v10  ;;  %v2231_v19 = vadd.f32 %v2230_v14, %v2229_v7  ;;  %v1989_v23 = vadd.f32 %v1988_v12, %v1987_v11  ;;  %v2688_v51 = vpack.c.bf16 %v1866_v27, %v1866_v27  ;;  %v1976_v31 = vmul.f32 %v4064_v43, %v1866_v27  ;;  %s2499_s18 = sshll.u32 %s3633_s27, 2  ;;  %s2271_s12 = scalar_lea.sflag [#allocation5], %s3633_s27 }
 0x247   : > { %v2263_v22 = vrot.slane %v2262_v15, 4  ;;  %v2009_v24 = vmul.f32 %v1975_v16, %v1865_v8  ;;  %v1990_v26 = vsel %vm364_vm2, %v1975_v16, 0.0  ;;  %v2023_v30 = vadd.f32 %v2022_v18, %v2021_v17  ;;  %s3274_s17 = scalar_lea.vmem %s4132_s15, 576  ;;  %s3400_s21 = smov [#allocation11]  }
 0x248   : > { %v2232_v28 = vrot.slane %v2231_v19, 2  ;;  %v1991_v20 = vadd.f32 %v1990_v26, %v1989_v23  ;;  %1913 = vst.msk [vmem:[%s3998_s28 + $0x20] sm:$0xf] %vm1904_vm5, %v2688_v51  ;;  %v1992_v35 = vsel %vm364_vm2, %v1976_v31, 0.0  ;;  %v2010_v36 = vmul.f32 %v1976_v31, %v1866_v27  ;;  %p3275_p11 = scmp.ne.s32.totalorder %s4132_s15, %s3274_s17  ;;  %s3278_s10 = sshll.u32 %s3400_s21, 4  ;;  %s3279_s10 = int_to_ptr.vmem [resolvable:$false] %s3278_s10 }
 0x249   : > { %v2264_v29 = vadd.f32 %v2263_v22, %v2262_v15  ;;  %v2024_v32 = vsel %vm364_vm2, %v2009_v24, 0.0  ;;  %s3280_s29 = scalar_lea.vmem %s3279_s10, 1152  ;;  %p3281_p6 = scmp.lt.s32.totalorder %s4132_s15, %s3279_s10 }
 0x24a   : > { %v2233_v33 = vadd.f32 %v2232_v28, %v2231_v19  ;;  %p3276_p12 = pnand %p3275_p11, %p4264_p0  ;;  %p3282_p13 = scmp.lt.s32.totalorder %s3280_s29, %s3274_s17 }
 0x24b   : > { %v2265_v34 = vrot.slane %v2264_v29, 2 }
 0x24c   : > { %v2234_v37 = vrot.slane %v2233_v33, 1  ;;  %p3277_p3 = pneg %p3276_p12  ;;  %p3283_p8 = por %p3282_p13, %p3281_p6 }
 0x24d   : > { %v2266_v38 = vadd.f32 %v2265_v34, %v2264_v29 }
 0x24e   : > { %p3284_p7 = pnand %p3283_p8, %p3277_p3 }
 0x250   : > { %3287 = shalt.err (!%p3284_p7)
}
 0x251   : > { %s3288_s28 = scalar_lea.hbm %s4130_s16, 576  ;;  %s3292_s14 = scalar_lea.hbm %s4222_s4, 1152 }
 0x252   : > { %p3289_p9 = scmp.ne.s32.totalorder %s4130_s16, %s3288_s28  ;;  %p3293_p4 = scmp.lt.u32.totalorder %s4130_s16, %s4222_s4 }
 0x253   : > { %p3294_p2 = scmp.lt.u32.totalorder %s3292_s14, %s3288_s28  ;;  %p3296_p11 = scmp.lt.u32.totalorder %s3288_s28, %s4130_s16 }
 0x254   : > { %p3290_p10 = pnand %p3289_p9, %p4264_p0 }
 0x255   : > { %p3295_p5 = por %p3294_p2, %p3293_p4 }
 0x256   : > { %p3291_p1 = pneg %p3290_p10 }
 0x257   : > { %p3297_p12 = por %p3296_p11, %p3295_p5 }
 0x259   : > { %p3298_p3 = pnand %p3297_p12, %p3291_p1 }
 0x25b   : > { %3301 = shalt.err (!%p3298_p3)
}
 0x25c   : > { %2998 = dma.vmem_to_hbm [thread:$0]  (%p4264_p0), %s4132_s15, 576, %s4130_s16, %s2271_s12, %s3398_s8, %s3398_s8, %s3399_s11   ;;  %v1993_v39 = vadd.f32 %v1992_v35, %v1991_v20  ;;  %v2025_v40 = vadd.f32 %v2024_v32, %v2023_v30  ;;  %vm2000_vm6 = vcmask 57344   ;;  %v2026_v41 = vsel %vm364_vm2, %v2010_v36, 0.0 }
 0x25d   : > { %v2235_v42 = vadd.f32 %v2234_v37, %v2233_v33  ;;  %v2267_v43 = vrot.slane %v2266_v38, 1  ;;  %s329_s13 = scalar_lea.vmem [#allocation14], %s2499_s18  ;;  %s2677_s8 = sshll.u32 %s3458_s25, 6 }
 0x25e   : > { %v1994_v21 = vrot.slane %v1993_v39, 4  ;;  %v2027_v44 = vadd.f32 %v2026_v41, %v2025_v40  ;;  %s2326_s11 = sshll.u32 %s329_s13, 4  ;;  %s4177_s7 = scalar_lea.hbm %s4224_s6, %s2677_s8  ;;  %s2327_s11 = int_to_ptr.vmem [resolvable:$true] %s2326_s11 }
 0x25f   : > { %v2268_v45 = vadd.f32 %v2267_v43, %v2266_v38  ;;  %2236 = vst.msk [vmem:[%s329_s13 + $0x2] sm:$0x1] %vm2000_vm6, %v2235_v42  ;;  %s3302_s16 = scalar_lea.vmem %s2327_s11, 64  ;;  %s3401_s25 = smov [#allocation14]  }
 0x260   : > { %v1995_v46 = vadd.f32 %v1994_v21, %v1993_v39  ;;  %v2028_v47 = vrot.slane %v2027_v44, 4  ;;  %p3303_p6 = scmp.ne.s32.totalorder %s2327_s11, %s3302_s16  ;;  %s3306_s18 = sshll.u32 %s3401_s25, 4  ;;  %s3307_s18 = int_to_ptr.vmem [resolvable:$false] %s3306_s18 }
 0x261   : > { %2269 = vst.msk [vmem:[%s329_s13 + $0x3] sm:$0x1] %vm2000_vm6, %v2268_v45  ;;  %s3308_s12 = scalar_lea.vmem %s3307_s18, 128  ;;  %p3309_p7 = scmp.lt.s32.totalorder %s2327_s11, %s3307_s18 }
 0x262   : > { %v1996_v48 = vrot.slane %v1995_v46, 2  ;;  %v2029_v49 = vadd.f32 %v2028_v47, %v2027_v44  ;;  %p3304_p13 = pnand %p3303_p6, %p4264_p0  ;;  %p3310_p9 = scmp.lt.s32.totalorder %s3308_s12, %s3302_s16 }
 0x264   : > { %v1997_v50 = vadd.f32 %v1996_v48, %v1995_v46  ;;  %v2030_v52 = vrot.slane %v2029_v49, 2  ;;  %p3305_p8 = pneg %p3304_p13  ;;  %p3311_p10 = por %p3310_p9, %p3309_p7 }
 0x266   : > { %v1998_v25 = vrot.slane %v1997_v50, 1  ;;  %v2031_v53 = vadd.f32 %v2030_v52, %v2029_v49  ;;  %p3312_p1 = pnand %p3311_p10, %p3305_p8 }
 0x268   : > { %v1999_v54 = vadd.f32 %v1998_v25, %v1997_v50  ;;  %v2032_v55 = vrot.slane %v2031_v53, 1 }
 0x26a   : > { %2001 = vst.msk [vmem:[%s329_s13] sm:$0x1] %vm2000_vm6, %v1999_v54  ;;  %v2033_v56 = vadd.f32 %v2032_v55, %v2031_v53 }
 0x26c   : > { %2034 = vst.msk [vmem:[%s329_s13 + $0x1] sm:$0x1] %vm2000_vm6, %v2033_v56 }
 0x26d   : > { %3315 = shalt.err (!%p3312_p1)
}
 0x26e   : > { %s3316_s17 = scalar_lea.hbm %s4177_s7, 64  ;;  %s3320_s29 = scalar_lea.hbm %s4224_s6, 128 }
 0x26f   : > { %p3317_p4 = scmp.ne.s32.totalorder %s4177_s7, %s3316_s17  ;;  %p3321_p11 = scmp.lt.u32.totalorder %s4177_s7, %s4224_s6 }
 0x270   : > { %p3322_p12 = scmp.lt.u32.totalorder %s3320_s29, %s3316_s17  ;;  %p3324_p6 = scmp.lt.u32.totalorder %s3316_s17, %s4177_s7 }
 0x271   : > { %p3318_p2 = pnand %p3317_p4, %p4264_p0 }
 0x272   : > { %p3323_p3 = por %p3322_p12, %p3321_p11 }
 0x273   : > { %p3319_p5 = pneg %p3318_p2 }
 0x274   : > { %p3325_p13 = por %p3324_p6, %p3323_p3 }
 0x276   : > { %p3326_p8 = pnand %p3325_p13, %p3319_p5 }
 0x278   : > { %3329 = shalt.err (!%p3326_p8)
}
 0x279   : > { %3000 = dma.vmem_to_hbm [thread:$0]  (%p4264_p0), %s2327_s11, 64, %s4177_s7, %s4087_s2  }
 0x27a PF: > { %s4265_s20 = sld [smem:[#allocation21_spill]]  ;;  %s4266_s14 = sld [smem:[#allocation24_spill]] }
 0x27b   : > { %p4268_p9 = scmp.ge.s32.totalorder %s3384_s24, 2 }
 0x280   : > { %s2338_s30 = sand.u32 1, %s4265_s20   ;;  %p4267_p7 = scmp.ne.s32.totalorder %s4266_s14, 0 }
 0x281   : > { %s2339_s19 = scalar_lea.sflag [#allocation5], %s2338_s30 }
 0x282   : > { %p3019_p10 = pnand %p4268_p9, %p4267_p7 }
 0x284   : > { %3363 = dma.done.wait (!%p3019_p10), %s2339_s19, 576  }
 0x285   : > { %3365 = vsyncadd (!%p3019_p10), %s2339_s19, 4294966720  ;;  %s4269_s13 = sadd.s32 4294967294, %s3384_s24  }
 0x286   : > { %s2347_s8 = sand.u32 1, %s4269_s13  }
 0x287   : > { %s2348_s27 = scalar_lea.sflag [#allocation13], %s2347_s8 }
 0x288   : > { %3367 = dma.done.wait (!%p3019_p10), %s2348_s27, 640  }
 0x289   : > { %3369 = vsyncadd (!%p3019_p10), %s2348_s27, 4294966656  ;;  %s4270_s24 = sld [smem:[#allocation22_spill]]  ;;  %s4271_s9 = sld [smem:[#allocation23_spill]] }
 0x28a   : > { %s4272_s21 = smov %s3376_s22  ;;  %s4273_s22 = smov %s3380_s23 }
 0x28f   : > { %p25_p0 = scmp.ge.s32.totalorder %s4270_s24, 4   ;;  %s4274_s23 = smov %s4271_s9 }
 0x291   :  { %27 = sbr.rel (!%p25_p0) target bundleno = 11 (0xb), region = 137 }
 0x298   :  { %2362 = vsyncpa [#allocation4], 1 }
 0x299   :  { %2364 = vsyncpa [#allocation4 + $0x1], 1 }
 0x29a   :  { %2365 = vsyncpa [#allocation7], 1 }
 0x29b   :  { %2367 = vsyncpa [#allocation7 + $0x1], 1 }
 0x29c   :  { %2368 = vsyncpa [#allocation10], 1 }
 0x29d   :  { %2369 = vsyncpa [#allocation5], 1 }
 0x29e   :  { %2371 = vsyncpa [#allocation5 + $0x1], 1 }
 0x29f   :  { %2372 = vsyncpa [#allocation13], 1 }
 0x2a0   :  { %2374 = vsyncpa [#allocation13 + $0x1], 1 }

</bundles_post_ra>
